<compile_context>
chip_gen: v5e
topology: v5e:2x2
jax: 0.10.0
libtpu: 0.0.40
codegen_flags: <defaults>
</compile_context>

<pallas_src>
import functools
import math

import jax
import jax.numpy as jnp
from jax.experimental import pallas as pl
from jax.experimental.pallas import tpu as pltpu

_LN_EPS = 1e-5  # PyTorch nn.LayerNorm default


def _layer_norm(x, w, b):
    mu = jnp.mean(x, axis=-1, keepdims=True)
    var = jnp.mean((x - mu) ** 2, axis=-1, keepdims=True)
    return (x - mu) * jax.lax.rsqrt(var + _LN_EPS) * w + b


def _transformer_kernel(n_head,
                        x_ref,
                        ln1_w_ref, ln1_b_ref,
                        w_q_ref, b_q_ref, w_k_ref, b_k_ref, w_v_ref, b_v_ref,
                        w_out_ref, b_out_ref,
                        ln2_w_ref, ln2_b_ref,
                        w_fc_ref, b_fc_ref, w_proj_ref, b_proj_ref,
                        o_ref):
    """One (batch_block, layer) grid step of the ResidualAttentionBlock stack.

    o_ref is resident across the layer grid axis and doubles as the f32
    activation buffer; the weight refs belong to the current layer only.
    """
    bb, seq, d_model = x_ref.shape
    head_dim = d_model // n_head
    mm_dtype = w_q_ref.dtype                 # matmul operand dtype (bf16)

    layer = pl.program_id(1)

    @pl.when(layer == 0)
    def _():                                 # load this block's input once
        o_ref[...] = x_ref[...]

    x = o_ref[...].reshape(bb * seq, d_model)     # (T, D) f32 residual stream

    # ---- attention branch: x + attn(ln_1(x)) -------------------------------
    h = _layer_norm(x, ln1_w_ref[...], ln1_b_ref[...]).astype(mm_dtype)
    # 1/sqrt(head_dim) is pre-folded into w_q / b_q on the host.
    q = jnp.dot(h, w_q_ref[...], preferred_element_type=jnp.float32) + b_q_ref[...]
    k = jnp.dot(h, w_k_ref[...], preferred_element_type=jnp.float32) + b_k_ref[...]
    v = jnp.dot(h, w_v_ref[...], preferred_element_type=jnp.float32) + b_v_ref[...]

    q3 = q.reshape(bb, seq, d_model).astype(mm_dtype)
    k3 = k.reshape(bb, seq, d_model).astype(mm_dtype)
    v3 = v.reshape(bb, seq, d_model).astype(mm_dtype)

    # Batched over the batch dim; static unroll over heads only.
    # TODO(synk): pack pairs of heads onto 128 lanes when head_dim < 128.
    head_outs = []
    for hh in range(n_head):
        c0 = hh * head_dim
        qh = q3[:, :, c0:c0 + head_dim]                       # (BB, L, hd)
        kh = k3[:, :, c0:c0 + head_dim]
        vh = v3[:, :, c0:c0 + head_dim]
        s = jnp.einsum('bqd,bkd->bqk', qh, kh,
                       preferred_element_type=jnp.float32)    # (BB, L, L) f32
        s = s - jnp.max(s, axis=-1, keepdims=True)
        p = jnp.exp(s)
        p = p * pl.reciprocal(jnp.sum(p, axis=-1, keepdims=True), approx=True)
        head_outs.append(
            jnp.einsum('bqk,bkd->bqd', p.astype(mm_dtype), vh,
                       preferred_element_type=jnp.float32))
    attn = jnp.concatenate(head_outs, axis=-1).reshape(bb * seq, d_model)
    attn = jnp.dot(attn.astype(mm_dtype), w_out_ref[...],
                   preferred_element_type=jnp.float32) + b_out_ref[...]
    x = x + attn

    # ---- MLP branch: x + c_proj(QuickGELU(c_fc(ln_2(x)))) ------------------
    h2 = _layer_norm(x, ln2_w_ref[...], ln2_b_ref[...]).astype(mm_dtype)
    fc = jnp.dot(h2, w_fc_ref[...],
                 preferred_element_type=jnp.float32) + b_fc_ref[...]
    fc = fc * jax.nn.sigmoid(1.702 * fc)                      # QuickGELU (f32)
    proj = jnp.dot(fc.astype(mm_dtype), w_proj_ref[...],
                   preferred_element_type=jnp.float32) + b_proj_ref[...]
    x = x + proj

    o_ref[...] = x.reshape(bb, seq, d_model)


_PARAM_ORDER = ("ln1_w", "ln1_b",
                "w_q", "b_q", "w_k", "b_k", "w_v", "b_v",
                "w_out", "b_out",
                "ln2_w", "ln2_b",
                "w_fc", "b_fc", "w_proj", "b_proj")


def transformer_forward(x_lbd, params, n_head, *, block_b=1):
    """x_lbd: (L, B, D) — same convention as the PyTorch CLIP Transformer."""
    L, B, D = x_lbd.shape
    num_layers = params["w_q"].shape[0]
    assert D % n_head == 0, "d_model must be divisible by n_head"
    assert B % block_b == 0, "batch must be divisible by the batch block"

    x_bld = jnp.transpose(x_lbd, (1, 0, 2))        # (B, L, D)

    def act_spec():
        return pl.BlockSpec((block_b, L, D), lambda b, l: (b, 0, 0))

    def weight_spec(arr):
        _, r, c = arr.shape
        return pl.BlockSpec((None, r, c), lambda b, l: (l, 0, 0))

    weight_args = [params[k] for k in _PARAM_ORDER]
    grid = (B // block_b, num_layers)              # layer axis innermost

    out = pl.pallas_call(
        functools.partial(_transformer_kernel, n_head),
        out_shape=jax.ShapeDtypeStruct((B, L, D), jnp.float32),
        grid=grid,
        in_specs=[act_spec()] + [weight_spec(a) for a in weight_args],
        out_specs=act_spec(),
        compiler_params=pltpu.CompilerParams(
            dimension_semantics=("parallel", "arbitrary"),
            vmem_limit_bytes=48 * 1024 * 1024),
    )(x_bld, *weight_args)
    return jnp.transpose(out, (1, 0, 2))           # back to (L, B, D)


def init_params(key, width, layers, n_head, w_dtype=jnp.bfloat16):
    """Synthetic parameters: weights pre-transposed for `x @ W`, stored in
    `w_dtype`, attention scale folded into the Q projection, stacked along a
    leading layer axis so the kernel can stream them per layer."""
    D = width
    scale = 1.0 / math.sqrt(D // n_head)
    acc = {k: [] for k in _PARAM_ORDER}
    for _ in range(layers):
        key, *ks = jax.random.split(key, 13)
        w_in = 0.02 * jax.random.normal(ks[0], (3 * D, D), jnp.float32)
        b_in = 0.01 * jax.random.normal(ks[1], (3 * D,), jnp.float32)
        w_out = 0.02 * jax.random.normal(ks[2], (D, D), jnp.float32)
        b_out = 0.01 * jax.random.normal(ks[3], (D,), jnp.float32)
        w_fc = 0.02 * jax.random.normal(ks[4], (4 * D, D), jnp.float32)
        b_fc = 0.01 * jax.random.normal(ks[5], (4 * D,), jnp.float32)
        w_pr = 0.02 * jax.random.normal(ks[6], (D, 4 * D), jnp.float32)
        b_pr = 0.01 * jax.random.normal(ks[7], (D,), jnp.float32)
        ln1_w = 1.0 + 0.1 * jax.random.normal(ks[8], (1, D), jnp.float32)
        ln1_b = 0.05 * jax.random.normal(ks[9], (1, D), jnp.float32)
        ln2_w = 1.0 + 0.1 * jax.random.normal(ks[10], (1, D), jnp.float32)
        ln2_b = 0.05 * jax.random.normal(ks[11], (1, D), jnp.float32)

        acc["ln1_w"].append(ln1_w)
        acc["ln1_b"].append(ln1_b)
        acc["w_q"].append((w_in[0:D].T * scale).astype(w_dtype))
        acc["b_q"].append((b_in[0:D] * scale).reshape(1, D))
        acc["w_k"].append(w_in[D:2 * D].T.astype(w_dtype))
        acc["b_k"].append(b_in[D:2 * D].reshape(1, D))
        acc["w_v"].append(w_in[2 * D:].T.astype(w_dtype))
        acc["b_v"].append(b_in[2 * D:].reshape(1, D))
        acc["w_out"].append(w_out.T.astype(w_dtype))
        acc["b_out"].append(b_out.reshape(1, D))
        acc["ln2_w"].append(ln2_w)
        acc["ln2_b"].append(ln2_b)
        acc["w_fc"].append(w_fc.T.astype(w_dtype))
        acc["b_fc"].append(b_fc.reshape(1, 4 * D))
        acc["w_proj"].append(w_pr.T.astype(w_dtype))
        acc["b_proj"].append(b_pr.reshape(1, D))
    return {k: jnp.stack(v) for k, v in acc.items()}


def reference_forward(x, params, n_head):
    """Pure-JAX f32 mirror of the PyTorch module (same bf16-rounded,
    scale-folded parameter values), for correctness checking."""
    L, B, D = x.shape
    H, hd = n_head, D // n_head
    f32 = lambda a: a.astype(jnp.float32)
    num_layers = params["w_q"].shape[0]

    def split_heads(t):                        # (L, B, D) -> (B*H, L, hd)
        return t.reshape(L, B, H, hd).transpose(1, 2, 0, 3).reshape(B * H, L, hd)

    for i in range(num_layers):
        h = _layer_norm(x, params["ln1_w"][i], params["ln1_b"][i])
        q = h @ f32(params["w_q"][i]) + params["b_q"][i]   # scale pre-folded
        k = h @ f32(params["w_k"][i]) + params["b_k"][i]
        v = h @ f32(params["w_v"][i]) + params["b_v"][i]
        qh, kh, vh = split_heads(q), split_heads(k), split_heads(v)
        s = jnp.einsum('bld,bmd->blm', qh, kh)
        p = jax.nn.softmax(s, axis=-1)
        o = jnp.einsum('blm,bmd->bld', p, vh)
        o = o.reshape(B, H, L, hd).transpose(2, 0, 1, 3).reshape(L, B, D)
        x = x + (o @ f32(params["w_out"][i]) + params["b_out"][i])
        h2 = _layer_norm(x, params["ln2_w"][i], params["ln2_b"][i])
        fc = h2 @ f32(params["w_fc"][i]) + params["b_fc"][i]
        fc = fc * jax.nn.sigmoid(1.702 * fc)
        x = x + (fc @ f32(params["w_proj"][i]) + params["b_proj"][i])
    return x


if __name__ == "__main__":
    # Small but lane-dense shapes: D a multiple of 128, L a multiple of 8.
    width, layers, heads = 128, 2, 4
    seq, batch = 16, 2

    key = jax.random.PRNGKey(0)
    kx, kp = jax.random.split(key)
    x = jax.random.normal(kx, (seq, batch, width), jnp.float32)   # (L, B, D)
    params = init_params(kp, width, layers, heads)

    out = transformer_forward(x, params, heads, block_b=1)
    out = jax.block_until_ready(out)

    ref = reference_forward(x, params, heads)
    err = float(jnp.max(jnp.abs(out - ref)))
    assert out.shape == x.shape, f"shape mismatch: {out.shape} vs {x.shape}"
    # bf16 matmul operands (f32 accumulation) vs. an all-f32 reference.
    assert err < 2e-2, f"numerical mismatch: max abs err = {err}"
    print("KERNEL_OK")
</pallas_src>

<mosaic_0001>
module attributes {stable_mosaic.version = 11 : i64} {
  func.func @_transformer_kernel(%arg0: i32, %arg1: i32, %arg2: memref<1x16x128xf32, #tpu.memory_space<vmem>>, %arg3: memref<1x1x128xf32, #tpu.memory_space<vmem>>, %arg4: memref<1x1x128xf32, #tpu.memory_space<vmem>>, %arg5: memref<1x128x128xbf16, #tpu.memory_space<vmem>>, %arg6: memref<1x1x128xf32, #tpu.memory_space<vmem>>, %arg7: memref<1x128x128xbf16, #tpu.memory_space<vmem>>, %arg8: memref<1x1x128xf32, #tpu.memory_space<vmem>>, %arg9: memref<1x128x128xbf16, #tpu.memory_space<vmem>>, %arg10: memref<1x1x128xf32, #tpu.memory_space<vmem>>, %arg11: memref<1x128x128xbf16, #tpu.memory_space<vmem>>, %arg12: memref<1x1x128xf32, #tpu.memory_space<vmem>>, %arg13: memref<1x1x128xf32, #tpu.memory_space<vmem>>, %arg14: memref<1x1x128xf32, #tpu.memory_space<vmem>>, %arg15: memref<1x128x512xbf16, #tpu.memory_space<vmem>>, %arg16: memref<1x1x512xf32, #tpu.memory_space<vmem>>, %arg17: memref<1x512x128xbf16, #tpu.memory_space<vmem>>, %arg18: memref<1x1x128xf32, #tpu.memory_space<vmem>>, %arg19: memref<1x16x128xf32, #tpu.memory_space<vmem>>) attributes {dimension_semantics = [#tpu.dimension_semantics<parallel>, #tpu.dimension_semantics<arbitrary>], iteration_bounds = array<i64: 2, 2>, scalar_prefetch = 0 : i64, scratch_operands = 0 : i64, tpu.core_type = #tpu.core_type<tc>, window_params = [{transform_indices = @transform_0, window_bounds = array<i64: 1, 16, 128>}, {transform_indices = @transform_1, window_bounds = array<i64: 1, 1, 128>}, {transform_indices = @transform_2, window_bounds = array<i64: 1, 1, 128>}, {transform_indices = @transform_3, window_bounds = array<i64: 1, 128, 128>}, {transform_indices = @transform_4, window_bounds = array<i64: 1, 1, 128>}, {transform_indices = @transform_5, window_bounds = array<i64: 1, 128, 128>}, {transform_indices = @transform_6, window_bounds = array<i64: 1, 1, 128>}, {transform_indices = @transform_7, window_bounds = array<i64: 1, 128, 128>}, {transform_indices = @transform_8, window_bounds = array<i64: 1, 1, 128>}, {transform_indices = @transform_9, window_bounds = array<i64: 1, 128, 128>}, {transform_indices = @transform_10, window_bounds = array<i64: 1, 1, 128>}, {transform_indices = @transform_11, window_bounds = array<i64: 1, 1, 128>}, {transform_indices = @transform_12, window_bounds = array<i64: 1, 1, 128>}, {transform_indices = @transform_13, window_bounds = array<i64: 1, 128, 512>}, {transform_indices = @transform_14, window_bounds = array<i64: 1, 1, 512>}, {transform_indices = @transform_15, window_bounds = array<i64: 1, 512, 128>}, {transform_indices = @transform_16, window_bounds = array<i64: 1, 1, 128>}, {transform_indices = @transform_17, window_bounds = array<i64: 1, 16, 128>}]} {
    %c0_i32 = arith.constant 0 : i32
    %0 = arith.cmpi eq, %arg1, %c0_i32 : i32
    %1 = arith.extui %0 : i1 to i32
    %c0_i32_0 = arith.constant 0 : i32
    %2 = arith.cmpi ne, %1, %c0_i32_0 : i32
    scf.if %2 {
      %c0_87 = arith.constant 0 : index
      %c0_88 = arith.constant 0 : index
      %c0_89 = arith.constant 0 : index
      %187 = vector.load %arg2[%c0_87, %c0_88, %c0_89] : memref<1x16x128xf32, #tpu.memory_space<vmem>>, vector<1x16x128xf32>
      %c0_90 = arith.constant 0 : index
      %c0_91 = arith.constant 0 : index
      %c0_92 = arith.constant 0 : index
      %188 = vector.load %arg19[%c0_90, %c0_91, %c0_92] : memref<1x16x128xf32, #tpu.memory_space<vmem>>, vector<1x16x128xf32>
      tpu.vector_store %arg19[%c0_90, %c0_91, %c0_92], %187 {strides = array<i32>} : memref<1x16x128xf32, #tpu.memory_space<vmem>>, vector<1x16x128xf32>,
    } else {
    }
    %c0 = arith.constant 0 : index
    %c0_1 = arith.constant 0 : index
    %c0_2 = arith.constant 0 : index
    %3 = vector.load %arg19[%c0, %c0_1, %c0_2] : memref<1x16x128xf32, #tpu.memory_space<vmem>>, vector<1x16x128xf32>
    %4 = vector.shape_cast %3 : vector<1x16x128xf32> to vector<16x128xf32>
    %c0_3 = arith.constant 0 : index
    %c0_4 = arith.constant 0 : index
    %c0_5 = arith.constant 0 : index
    %5 = vector.load %arg3[%c0_3, %c0_4, %c0_5] : memref<1x1x128xf32, #tpu.memory_space<vmem>>, vector<1x1x128xf32>
    %6 = vector.shape_cast %5 : vector<1x1x128xf32> to vector<1x128xf32>
    %c0_6 = arith.constant 0 : index
    %c0_7 = arith.constant 0 : index
    %c0_8 = arith.constant 0 : index
    %7 = vector.load %arg4[%c0_6, %c0_7, %c0_8] : memref<1x1x128xf32, #tpu.memory_space<vmem>>, vector<1x1x128xf32>
    %8 = vector.shape_cast %7 : vector<1x1x128xf32> to vector<1x128xf32>
    %cst = arith.constant dense<0.000000e+00> : vector<16xf32>
    %9 = vector.multi_reduction <add>, %4, %cst [1] : vector<16x128xf32> to vector<16xf32>
    %10 = vector.shape_cast %9 : vector<16xf32> to vector<16x1xf32>
    %cst_9 = arith.constant 1.280000e+02 : f32
    %11 = vector.broadcast %cst_9 : f32 to vector<16x1xf32>
    %12 = arith.divf %10, %11 : vector<16x1xf32>
    %13 = vector.broadcast %12 : vector<16x1xf32> to vector<16x128xf32>
    %14 = arith.subf %4, %13 : vector<16x128xf32>
    %15 = arith.mulf %14, %14 : vector<16x128xf32>
    %cst_10 = arith.constant dense<0.000000e+00> : vector<16xf32>
    %16 = vector.multi_reduction <add>, %15, %cst_10 [1] : vector<16x128xf32> to vector<16xf32>
    %17 = vector.shape_cast %16 : vector<16xf32> to vector<16x1xf32>
    %cst_11 = arith.constant 1.280000e+02 : f32
    %18 = vector.broadcast %cst_11 : f32 to vector<16x1xf32>
    %19 = arith.divf %17, %18 : vector<16x1xf32>
    %20 = vector.broadcast %12 : vector<16x1xf32> to vector<16x128xf32>
    %21 = arith.subf %4, %20 : vector<16x128xf32>
    %cst_12 = arith.constant 9.99999974E-6 : f32
    %22 = vector.broadcast %cst_12 : f32 to vector<16x1xf32>
    %23 = arith.addf %19, %22 : vector<16x1xf32>
    %24 = math.rsqrt %23 : vector<16x1xf32>
    %25 = vector.broadcast %24 : vector<16x1xf32> to vector<16x128xf32>
    %26 = arith.mulf %21, %25 : vector<16x128xf32>
    %27 = vector.broadcast %6 : vector<1x128xf32> to vector<16x128xf32>
    %28 = arith.mulf %26, %27 : vector<16x128xf32>
    %29 = vector.broadcast %8 : vector<1x128xf32> to vector<16x128xf32>
    %30 = arith.addf %28, %29 : vector<16x128xf32>
    %31 = arith.truncf %30 : vector<16x128xf32> to vector<16x128xbf16>
    %c0_13 = arith.constant 0 : index
    %c0_14 = arith.constant 0 : index
    %c0_15 = arith.constant 0 : index
    %32 = vector.load %arg5[%c0_13, %c0_14, %c0_15] : memref<1x128x128xbf16, #tpu.memory_space<vmem>>, vector<1x128x128xbf16>
    %33 = vector.shape_cast %32 : vector<1x128x128xbf16> to vector<128x128xbf16>
    %cst_16 = arith.constant dense<0.000000e+00> : vector<16x128xf32>
    %34 = tpu.matmul %31, %33, %cst_16 {dimension_numbers = #tpu.dot_dimension_numbers<[1], [0], [0], [1], [0, 0, 1, 1], [], []>} : vector<16x128xbf16>, vector<128x128xbf16>, vector<16x128xf32> -> vector<16x128xf32>
    %c0_17 = arith.constant 0 : index
    %c0_18 = arith.constant 0 : index
    %c0_19 = arith.constant 0 : index
    %35 = vector.load %arg6[%c0_17, %c0_18, %c0_19] : memref<1x1x128xf32, #tpu.memory_space<vmem>>, vector<1x1x128xf32>
    %36 = vector.shape_cast %35 : vector<1x1x128xf32> to vector<1x128xf32>
    %37 = vector.broadcast %36 : vector<1x128xf32> to vector<16x128xf32>
    %38 = arith.addf %34, %37 : vector<16x128xf32>
    %c0_20 = arith.constant 0 : index
    %c0_21 = arith.constant 0 : index
    %c0_22 = arith.constant 0 : index
    %39 = vector.load %arg7[%c0_20, %c0_21, %c0_22] : memref<1x128x128xbf16, #tpu.memory_space<vmem>>, vector<1x128x128xbf16>
    %40 = vector.shape_cast %39 : vector<1x128x128xbf16> to vector<128x128xbf16>
    %cst_23 = arith.constant dense<0.000000e+00> : vector<16x128xf32>
    %41 = tpu.matmul %31, %40, %cst_23 {dimension_numbers = #tpu.dot_dimension_numbers<[1], [0], [0], [1], [0, 0, 1, 1], [], []>} : vector<16x128xbf16>, vector<128x128xbf16>, vector<16x128xf32> -> vector<16x128xf32>
    %c0_24 = arith.constant 0 : index
    %c0_25 = arith.constant 0 : index
    %c0_26 = arith.constant 0 : index
    %42 = vector.load %arg8[%c0_24, %c0_25, %c0_26] : memref<1x1x128xf32, #tpu.memory_space<vmem>>, vector<1x1x128xf32>
    %43 = vector.shape_cast %42 : vector<1x1x128xf32> to vector<1x128xf32>
    %44 = vector.broadcast %43 : vector<1x128xf32> to vector<16x128xf32>
    %45 = arith.addf %41, %44 : vector<16x128xf32>
    %c0_27 = arith.constant 0 : index
    %c0_28 = arith.constant 0 : index
    %c0_29 = arith.constant 0 : index
    %46 = vector.load %arg9[%c0_27, %c0_28, %c0_29] : memref<1x128x128xbf16, #tpu.memory_space<vmem>>, vector<1x128x128xbf16>
    %47 = vector.shape_cast %46 : vector<1x128x128xbf16> to vector<128x128xbf16>
    %cst_30 = arith.constant dense<0.000000e+00> : vector<16x128xf32>
    %48 = tpu.matmul %31, %47, %cst_30 {dimension_numbers = #tpu.dot_dimension_numbers<[1], [0], [0], [1], [0, 0, 1, 1], [], []>} : vector<16x128xbf16>, vector<128x128xbf16>, vector<16x128xf32> -> vector<16x128xf32>
    %c0_31 = arith.constant 0 : index
    %c0_32 = arith.constant 0 : index
    %c0_33 = arith.constant 0 : index
    %49 = vector.load %arg10[%c0_31, %c0_32, %c0_33] : memref<1x1x128xf32, #tpu.memory_space<vmem>>, vector<1x1x128xf32>
    %50 = vector.shape_cast %49 : vector<1x1x128xf32> to vector<1x128xf32>
    %51 = vector.broadcast %50 : vector<1x128xf32> to vector<16x128xf32>
    %52 = arith.addf %48, %51 : vector<16x128xf32>
    %53 = vector.shape_cast %38 : vector<16x128xf32> to vector<1x16x128xf32>
    %54 = arith.truncf %53 : vector<1x16x128xf32> to vector<1x16x128xbf16>
    %55 = vector.shape_cast %45 : vector<16x128xf32> to vector<1x16x128xf32>
    %56 = arith.truncf %55 : vector<1x16x128xf32> to vector<1x16x128xbf16>
    %57 = vector.shape_cast %52 : vector<16x128xf32> to vector<1x16x128xf32>
    %58 = arith.truncf %57 : vector<1x16x128xf32> to vector<1x16x128xbf16>
    %59 = vector.extract_strided_slice %54 {offsets = [0, 0, 0], sizes = [1, 16, 32], strides = [1, 1, 1]} : vector<1x16x128xbf16> to vector<1x16x32xbf16>
    %60 = vector.extract_strided_slice %56 {offsets = [0, 0, 0], sizes = [1, 16, 32], strides = [1, 1, 1]} : vector<1x16x128xbf16> to vector<1x16x32xbf16>
    %61 = vector.extract_strided_slice %58 {offsets = [0, 0, 0], sizes = [1, 16, 32], strides = [1, 1, 1]} : vector<1x16x128xbf16> to vector<1x16x32xbf16>
    "tpu.trace_start"() <{level = 10 : i32, message = "bqd,bkd->bqk"}> : () -> ()
    %cst_34 = arith.constant dense<0.000000e+00> : vector<1x16x16xf32>
    %62 = tpu.matmul %59, %60, %cst_34 {dimension_numbers = #tpu.dot_dimension_numbers<[2], [2], [1], [1], [0, 0, 0, 1, 1, 1], [0], [0]>} : vector<1x16x32xbf16>, vector<1x16x32xbf16>, vector<1x16x16xf32> -> vector<1x16x16xf32>
    "tpu.trace_stop"() : () -> ()
    %cst_35 = arith.constant dense<0xFF800000> : vector<1x16xf32>
    %63 = vector.multi_reduction <maximumf>, %62, %cst_35 [2] : vector<1x16x16xf32> to vector<1x16xf32>
    %64 = vector.shape_cast %63 : vector<1x16xf32> to vector<1x16x1xf32>
    %65 = vector.broadcast %64 : vector<1x16x1xf32> to vector<1x16x16xf32>
    %66 = arith.subf %62, %65 : vector<1x16x16xf32>
    %67 = math.exp %66 : vector<1x16x16xf32>
    %cst_36 = arith.constant dense<0.000000e+00> : vector<1x16xf32>
    %68 = vector.multi_reduction <add>, %67, %cst_36 [2] : vector<1x16x16xf32> to vector<1x16xf32>
    %69 = vector.shape_cast %68 : vector<1x16xf32> to vector<1x16x1xf32>
    %70 = tpu.reciprocal %69 {approx = true} : vector<1x16x1xf32> -> vector<1x16x1xf32>
    %71 = vector.broadcast %70 : vector<1x16x1xf32> to vector<1x16x16xf32>
    %72 = arith.mulf %67, %71 : vector<1x16x16xf32>
    %73 = arith.truncf %72 : vector<1x16x16xf32> to vector<1x16x16xbf16>
    "tpu.trace_start"() <{level = 10 : i32, message = "bqk,bkd->bqd"}> : () -> ()
    %cst_37 = arith.constant dense<0.000000e+00> : vector<1x16x32xf32>
    %74 = tpu.matmul %73, %61, %cst_37 {dimension_numbers = #tpu.dot_dimension_numbers<[2], [1], [1], [2], [0, 0, 0, 1, 1, 2], [0], [0]>} : vector<1x16x16xbf16>, vector<1x16x32xbf16>, vector<1x16x32xf32> -> vector<1x16x32xf32>
    "tpu.trace_stop"() : () -> ()
    %75 = vector.extract_strided_slice %54 {offsets = [0, 0, 32], sizes = [1, 16, 32], strides = [1, 1, 1]} : vector<1x16x128xbf16> to vector<1x16x32xbf16>
    %76 = vector.extract_strided_slice %56 {offsets = [0, 0, 32], sizes = [1, 16, 32], strides = [1, 1, 1]} : vector<1x16x128xbf16> to vector<1x16x32xbf16>
    %77 = vector.extract_strided_slice %58 {offsets = [0, 0, 32], sizes = [1, 16, 32], strides = [1, 1, 1]} : vector<1x16x128xbf16> to vector<1x16x32xbf16>
    "tpu.trace_start"() <{level = 10 : i32, message = "bqd,bkd->bqk"}> : () -> ()
    %cst_38 = arith.constant dense<0.000000e+00> : vector<1x16x16xf32>
    %78 = tpu.matmul %75, %76, %cst_38 {dimension_numbers = #tpu.dot_dimension_numbers<[2], [2], [1], [1], [0, 0, 0, 1, 1, 1], [0], [0]>} : vector<1x16x32xbf16>, vector<1x16x32xbf16>, vector<1x16x16xf32> -> vector<1x16x16xf32>
    "tpu.trace_stop"() : () -> ()
    %cst_39 = arith.constant dense<0xFF800000> : vector<1x16xf32>
    %79 = vector.multi_reduction <maximumf>, %78, %cst_39 [2] : vector<1x16x16xf32> to vector<1x16xf32>
    %80 = vector.shape_cast %79 : vector<1x16xf32> to vector<1x16x1xf32>
    %81 = vector.broadcast %80 : vector<1x16x1xf32> to vector<1x16x16xf32>
    %82 = arith.subf %78, %81 : vector<1x16x16xf32>
    %83 = math.exp %82 : vector<1x16x16xf32>
    %cst_40 = arith.constant dense<0.000000e+00> : vector<1x16xf32>
    %84 = vector.multi_reduction <add>, %83, %cst_40 [2] : vector<1x16x16xf32> to vector<1x16xf32>
    %85 = vector.shape_cast %84 : vector<1x16xf32> to vector<1x16x1xf32>
    %86 = tpu.reciprocal %85 {approx = true} : vector<1x16x1xf32> -> vector<1x16x1xf32>
    %87 = vector.broadcast %86 : vector<1x16x1xf32> to vector<1x16x16xf32>
    %88 = arith.mulf %83, %87 : vector<1x16x16xf32>
    %89 = arith.truncf %88 : vector<1x16x16xf32> to vector<1x16x16xbf16>
    "tpu.trace_start"() <{level = 10 : i32, message = "bqk,bkd->bqd"}> : () -> ()
    %cst_41 = arith.constant dense<0.000000e+00> : vector<1x16x32xf32>
    %90 = tpu.matmul %89, %77, %cst_41 {dimension_numbers = #tpu.dot_dimension_numbers<[2], [1], [1], [2], [0, 0, 0, 1, 1, 2], [0], [0]>} : vector<1x16x16xbf16>, vector<1x16x32xbf16>, vector<1x16x32xf32> -> vector<1x16x32xf32>
    "tpu.trace_stop"() : () -> ()
    %91 = vector.extract_strided_slice %54 {offsets = [0, 0, 64], sizes = [1, 16, 32], strides = [1, 1, 1]} : vector<1x16x128xbf16> to vector<1x16x32xbf16>
    %92 = vector.extract_strided_slice %56 {offsets = [0, 0, 64], sizes = [1, 16, 32], strides = [1, 1, 1]} : vector<1x16x128xbf16> to vector<1x16x32xbf16>
    %93 = vector.extract_strided_slice %58 {offsets = [0, 0, 64], sizes = [1, 16, 32], strides = [1, 1, 1]} : vector<1x16x128xbf16> to vector<1x16x32xbf16>
    "tpu.trace_start"() <{level = 10 : i32, message = "bqd,bkd->bqk"}> : () -> ()
    %cst_42 = arith.constant dense<0.000000e+00> : vector<1x16x16xf32>
    %94 = tpu.matmul %91, %92, %cst_42 {dimension_numbers = #tpu.dot_dimension_numbers<[2], [2], [1], [1], [0, 0, 0, 1, 1, 1], [0], [0]>} : vector<1x16x32xbf16>, vector<1x16x32xbf16>, vector<1x16x16xf32> -> vector<1x16x16xf32>
    "tpu.trace_stop"() : () -> ()
    %cst_43 = arith.constant dense<0xFF800000> : vector<1x16xf32>
    %95 = vector.multi_reduction <maximumf>, %94, %cst_43 [2] : vector<1x16x16xf32> to vector<1x16xf32>
    %96 = vector.shape_cast %95 : vector<1x16xf32> to vector<1x16x1xf32>
    %97 = vector.broadcast %96 : vector<1x16x1xf32> to vector<1x16x16xf32>
    %98 = arith.subf %94, %97 : vector<1x16x16xf32>
    %99 = math.exp %98 : vector<1x16x16xf32>
    %cst_44 = arith.constant dense<0.000000e+00> : vector<1x16xf32>
    %100 = vector.multi_reduction <add>, %99, %cst_44 [2] : vector<1x16x16xf32> to vector<1x16xf32>
    %101 = vector.shape_cast %100 : vector<1x16xf32> to vector<1x16x1xf32>
    %102 = tpu.reciprocal %101 {approx = true} : vector<1x16x1xf32> -> vector<1x16x1xf32>
    %103 = vector.broadcast %102 : vector<1x16x1xf32> to vector<1x16x16xf32>
    %104 = arith.mulf %99, %103 : vector<1x16x16xf32>
    %105 = arith.truncf %104 : vector<1x16x16xf32> to vector<1x16x16xbf16>
    "tpu.trace_start"() <{level = 10 : i32, message = "bqk,bkd->bqd"}> : () -> ()
    %cst_45 = arith.constant dense<0.000000e+00> : vector<1x16x32xf32>
    %106 = tpu.matmul %105, %93, %cst_45 {dimension_numbers = #tpu.dot_dimension_numbers<[2], [1], [1], [2], [0, 0, 0, 1, 1, 2], [0], [0]>} : vector<1x16x16xbf16>, vector<1x16x32xbf16>, vector<1x16x32xf32> -> vector<1x16x32xf32>
    "tpu.trace_stop"() : () -> ()
    %107 = vector.extract_strided_slice %54 {offsets = [0, 0, 96], sizes = [1, 16, 32], strides = [1, 1, 1]} : vector<1x16x128xbf16> to vector<1x16x32xbf16>
    %108 = vector.extract_strided_slice %56 {offsets = [0, 0, 96], sizes = [1, 16, 32], strides = [1, 1, 1]} : vector<1x16x128xbf16> to vector<1x16x32xbf16>
    %109 = vector.extract_strided_slice %58 {offsets = [0, 0, 96], sizes = [1, 16, 32], strides = [1, 1, 1]} : vector<1x16x128xbf16> to vector<1x16x32xbf16>
    "tpu.trace_start"() <{level = 10 : i32, message = "bqd,bkd->bqk"}> : () -> ()
    %cst_46 = arith.constant dense<0.000000e+00> : vector<1x16x16xf32>
    %110 = tpu.matmul %107, %108, %cst_46 {dimension_numbers = #tpu.dot_dimension_numbers<[2], [2], [1], [1], [0, 0, 0, 1, 1, 1], [0], [0]>} : vector<1x16x32xbf16>, vector<1x16x32xbf16>, vector<1x16x16xf32> -> vector<1x16x16xf32>
    "tpu.trace_stop"() : () -> ()
    %cst_47 = arith.constant dense<0xFF800000> : vector<1x16xf32>
    %111 = vector.multi_reduction <maximumf>, %110, %cst_47 [2] : vector<1x16x16xf32> to vector<1x16xf32>
    %112 = vector.shape_cast %111 : vector<1x16xf32> to vector<1x16x1xf32>
    %113 = vector.broadcast %112 : vector<1x16x1xf32> to vector<1x16x16xf32>
    %114 = arith.subf %110, %113 : vector<1x16x16xf32>
    %115 = math.exp %114 : vector<1x16x16xf32>
    %cst_48 = arith.constant dense<0.000000e+00> : vector<1x16xf32>
    %116 = vector.multi_reduction <add>, %115, %cst_48 [2] : vector<1x16x16xf32> to vector<1x16xf32>
    %117 = vector.shape_cast %116 : vector<1x16xf32> to vector<1x16x1xf32>
    %118 = tpu.reciprocal %117 {approx = true} : vector<1x16x1xf32> -> vector<1x16x1xf32>
    %119 = vector.broadcast %118 : vector<1x16x1xf32> to vector<1x16x16xf32>
    %120 = arith.mulf %115, %119 : vector<1x16x16xf32>
    %121 = arith.truncf %120 : vector<1x16x16xf32> to vector<1x16x16xbf16>
    "tpu.trace_start"() <{level = 10 : i32, message = "bqk,bkd->bqd"}> : () -> ()
    %cst_49 = arith.constant dense<0.000000e+00> : vector<1x16x32xf32>
    %122 = tpu.matmul %121, %109, %cst_49 {dimension_numbers = #tpu.dot_dimension_numbers<[2], [1], [1], [2], [0, 0, 0, 1, 1, 2], [0], [0]>} : vector<1x16x16xbf16>, vector<1x16x32xbf16>, vector<1x16x32xf32> -> vector<1x16x32xf32>
    "tpu.trace_stop"() : () -> ()
    %123 = tpu.concatenate %74, %90, %106, %122 in 2 : vector<1x16x32xf32>, vector<1x16x32xf32>, vector<1x16x32xf32>, vector<1x16x32xf32> -> vector<1x16x128xf32>
    %124 = vector.shape_cast %123 : vector<1x16x128xf32> to vector<16x128xf32>
    %125 = arith.truncf %124 : vector<16x128xf32> to vector<16x128xbf16>
    %c0_50 = arith.constant 0 : index
    %c0_51 = arith.constant 0 : index
    %c0_52 = arith.constant 0 : index
    %126 = vector.load %arg11[%c0_50, %c0_51, %c0_52] : memref<1x128x128xbf16, #tpu.memory_space<vmem>>, vector<1x128x128xbf16>
    %127 = vector.shape_cast %126 : vector<1x128x128xbf16> to vector<128x128xbf16>
    %cst_53 = arith.constant dense<0.000000e+00> : vector<16x128xf32>
    %128 = tpu.matmul %125, %127, %cst_53 {dimension_numbers = #tpu.dot_dimension_numbers<[1], [0], [0], [1], [0, 0, 1, 1], [], []>} : vector<16x128xbf16>, vector<128x128xbf16>, vector<16x128xf32> -> vector<16x128xf32>
    %c0_54 = arith.constant 0 : index
    %c0_55 = arith.constant 0 : index
    %c0_56 = arith.constant 0 : index
    %129 = vector.load %arg12[%c0_54, %c0_55, %c0_56] : memref<1x1x128xf32, #tpu.memory_space<vmem>>, vector<1x1x128xf32>
    %130 = vector.shape_cast %129 : vector<1x1x128xf32> to vector<1x128xf32>
    %131 = vector.broadcast %130 : vector<1x128xf32> to vector<16x128xf32>
    %132 = arith.addf %128, %131 : vector<16x128xf32>
    %133 = arith.addf %4, %132 : vector<16x128xf32>
    %c0_57 = arith.constant 0 : index
    %c0_58 = arith.constant 0 : index
    %c0_59 = arith.constant 0 : index
    %134 = vector.load %arg13[%c0_57, %c0_58, %c0_59] : memref<1x1x128xf32, #tpu.memory_space<vmem>>, vector<1x1x128xf32>
    %135 = vector.shape_cast %134 : vector<1x1x128xf32> to vector<1x128xf32>
    %c0_60 = arith.constant 0 : index
    %c0_61 = arith.constant 0 : index
    %c0_62 = arith.constant 0 : index
    %136 = vector.load %arg14[%c0_60, %c0_61, %c0_62] : memref<1x1x128xf32, #tpu.memory_space<vmem>>, vector<1x1x128xf32>
    %137 = vector.shape_cast %136 : vector<1x1x128xf32> to vector<1x128xf32>
    %cst_63 = arith.constant dense<0.000000e+00> : vector<16xf32>
    %138 = vector.multi_reduction <add>, %133, %cst_63 [1] : vector<16x128xf32> to vector<16xf32>
    %139 = vector.shape_cast %138 : vector<16xf32> to vector<16x1xf32>
    %cst_64 = arith.constant 1.280000e+02 : f32
    %140 = vector.broadcast %cst_64 : f32 to vector<16x1xf32>
    %141 = arith.divf %139, %140 : vector<16x1xf32>
    %142 = vector.broadcast %141 : vector<16x1xf32> to vector<16x128xf32>
    %143 = arith.subf %133, %142 : vector<16x128xf32>
    %144 = arith.mulf %143, %143 : vector<16x128xf32>
    %cst_65 = arith.constant dense<0.000000e+00> : vector<16xf32>
    %145 = vector.multi_reduction <add>, %144, %cst_65 [1] : vector<16x128xf32> to vector<16xf32>
    %146 = vector.shape_cast %145 : vector<16xf32> to vector<16x1xf32>
    %cst_66 = arith.constant 1.280000e+02 : f32
    %147 = vector.broadcast %cst_66 : f32 to vector<16x1xf32>
    %148 = arith.divf %146, %147 : vector<16x1xf32>
    %149 = vector.broadcast %141 : vector<16x1xf32> to vector<16x128xf32>
    %150 = arith.subf %133, %149 : vector<16x128xf32>
    %cst_67 = arith.constant 9.99999974E-6 : f32
    %151 = vector.broadcast %cst_67 : f32 to vector<16x1xf32>
    %152 = arith.addf %148, %151 : vector<16x1xf32>
    %153 = math.rsqrt %152 : vector<16x1xf32>
    %154 = vector.broadcast %153 : vector<16x1xf32> to vector<16x128xf32>
    %155 = arith.mulf %150, %154 : vector<16x128xf32>
    %156 = vector.broadcast %135 : vector<1x128xf32> to vector<16x128xf32>
    %157 = arith.mulf %155, %156 : vector<16x128xf32>
    %158 = vector.broadcast %137 : vector<1x128xf32> to vector<16x128xf32>
    %159 = arith.addf %157, %158 : vector<16x128xf32>
    %160 = arith.truncf %159 : vector<16x128xf32> to vector<16x128xbf16>
    %c0_68 = arith.constant 0 : index
    %c0_69 = arith.constant 0 : index
    %c0_70 = arith.constant 0 : index
    %161 = vector.load %arg15[%c0_68, %c0_69, %c0_70] : memref<1x128x512xbf16, #tpu.memory_space<vmem>>, vector<1x128x512xbf16>
    %162 = vector.shape_cast %161 : vector<1x128x512xbf16> to vector<128x512xbf16>
    %cst_71 = arith.constant dense<0.000000e+00> : vector<16x512xf32>
    %163 = tpu.matmul %160, %162, %cst_71 {dimension_numbers = #tpu.dot_dimension_numbers<[1], [0], [0], [1], [0, 0, 1, 1], [], []>} : vector<16x128xbf16>, vector<128x512xbf16>, vector<16x512xf32> -> vector<16x512xf32>
    %c0_72 = arith.constant 0 : index
    %c0_73 = arith.constant 0 : index
    %c0_74 = arith.constant 0 : index
    %164 = vector.load %arg16[%c0_72, %c0_73, %c0_74] : memref<1x1x512xf32, #tpu.memory_space<vmem>>, vector<1x1x512xf32>
    %165 = vector.shape_cast %164 : vector<1x1x512xf32> to vector<1x512xf32>
    %166 = vector.broadcast %165 : vector<1x512xf32> to vector<16x512xf32>
    %167 = arith.addf %163, %166 : vector<16x512xf32>
    %cst_75 = arith.constant 1.702000e+00 : f32
    %168 = vector.broadcast %cst_75 : f32 to vector<16x512xf32>
    %169 = arith.mulf %168, %167 : vector<16x512xf32>
    %170 = arith.negf %169 : vector<16x512xf32>
    %171 = math.exp %170 : vector<16x512xf32>
    %cst_76 = arith.constant 1.000000e+00 : f32
    %172 = vector.broadcast %cst_76 : f32 to vector<16x512xf32>
    %173 = arith.addf %172, %171 : vector<16x512xf32>
    %174 = arith.divf %172, %173 : vector<16x512xf32>
    %175 = arith.mulf %167, %174 : vector<16x512xf32>
    %176 = arith.truncf %175 : vector<16x512xf32> to vector<16x512xbf16>
    %c0_77 = arith.constant 0 : index
    %c0_78 = arith.constant 0 : index
    %c0_79 = arith.constant 0 : index
    %177 = vector.load %arg17[%c0_77, %c0_78, %c0_79] : memref<1x512x128xbf16, #tpu.memory_space<vmem>>, vector<1x512x128xbf16>
    %178 = vector.shape_cast %177 : vector<1x512x128xbf16> to vector<512x128xbf16>
    %cst_80 = arith.constant dense<0.000000e+00> : vector<16x128xf32>
    %179 = tpu.matmul %176, %178, %cst_80 {dimension_numbers = #tpu.dot_dimension_numbers<[1], [0], [0], [1], [0, 0, 1, 1], [], []>} : vector<16x512xbf16>, vector<512x128xbf16>, vector<16x128xf32> -> vector<16x128xf32>
    %c0_81 = arith.constant 0 : index
    %c0_82 = arith.constant 0 : index
    %c0_83 = arith.constant 0 : index
    %180 = vector.load %arg18[%c0_81, %c0_82, %c0_83] : memref<1x1x128xf32, #tpu.memory_space<vmem>>, vector<1x1x128xf32>
    %181 = vector.shape_cast %180 : vector<1x1x128xf32> to vector<1x128xf32>
    %182 = vector.broadcast %181 : vector<1x128xf32> to vector<16x128xf32>
    %183 = arith.addf %179, %182 : vector<16x128xf32>
    %184 = arith.addf %133, %183 : vector<16x128xf32>
    %185 = vector.shape_cast %184 : vector<16x128xf32> to vector<1x16x128xf32>
    %c0_84 = arith.constant 0 : index
    %c0_85 = arith.constant 0 : index
    %c0_86 = arith.constant 0 : index
    %186 = vector.load %arg19[%c0_84, %c0_85, %c0_86] : memref<1x16x128xf32, #tpu.memory_space<vmem>>, vector<1x16x128xf32>
    tpu.vector_store %arg19[%c0_84, %c0_85, %c0_86], %185 {strides = array<i32>} : memref<1x16x128xf32, #tpu.memory_space<vmem>>, vector<1x16x128xf32>,
    return
  }
  func.func @transform_0(%arg0: i32, %arg1: i32) -> (i32, i32, i32) {
    %c0_i32 = arith.constant 0 : i32
    %c0_i32_0 = arith.constant 0 : i32
    %c0_i32_1 = arith.constant 0 : i32
    return %arg0, %c0_i32, %c0_i32_0 : i32, i32, i32
  }
  func.func @transform_1(%arg0: i32, %arg1: i32) -> (i32, i32, i32) {
    %c0_i32 = arith.constant 0 : i32
    %c0_i32_0 = arith.constant 0 : i32
    %c0_i32_1 = arith.constant 0 : i32
    return %arg1, %c0_i32, %c0_i32_0 : i32, i32, i32
  }
  func.func @transform_2(%arg0: i32, %arg1: i32) -> (i32, i32, i32) {
    %c0_i32 = arith.constant 0 : i32
    %c0_i32_0 = arith.constant 0 : i32
    %c0_i32_1 = arith.constant 0 : i32
    return %arg1, %c0_i32, %c0_i32_0 : i32, i32, i32
  }
  func.func @transform_3(%arg0: i32, %arg1: i32) -> (i32, i32, i32) {
    %c0_i32 = arith.constant 0 : i32
    %c0_i32_0 = arith.constant 0 : i32
    %c0_i32_1 = arith.constant 0 : i32
    return %arg1, %c0_i32, %c0_i32_0 : i32, i32, i32
  }
  func.func @transform_4(%arg0: i32, %arg1: i32) -> (i32, i32, i32) {
    %c0_i32 = arith.constant 0 : i32
    %c0_i32_0 = arith.constant 0 : i32
    %c0_i32_1 = arith.constant 0 : i32
    return %arg1, %c0_i32, %c0_i32_0 : i32, i32, i32
  }
  func.func @transform_5(%arg0: i32, %arg1: i32) -> (i32, i32, i32) {
    %c0_i32 = arith.constant 0 : i32
    %c0_i32_0 = arith.constant 0 : i32
    %c0_i32_1 = arith.constant 0 : i32
    return %arg1, %c0_i32, %c0_i32_0 : i32, i32, i32
  }
  func.func @transform_6(%arg0: i32, %arg1: i32) -> (i32, i32, i32) {
    %c0_i32 = arith.constant 0 : i32
    %c0_i32_0 = arith.constant 0 : i32
    %c0_i32_1 = arith.constant 0 : i32
    return %arg1, %c0_i32, %c0_i32_0 : i32, i32, i32
  }
  func.func @transform_7(%arg0: i32, %arg1: i32) -> (i32, i32, i32) {
    %c0_i32 = arith.constant 0 : i32
    %c0_i32_0 = arith.constant 0 : i32
    %c0_i32_1 = arith.constant 0 : i32
    return %arg1, %c0_i32, %c0_i32_0 : i32, i32, i32
  }
  func.func @transform_8(%arg0: i32, %arg1: i32) -> (i32, i32, i32) {
    %c0_i32 = arith.constant 0 : i32
    %c0_i32_0 = arith.constant 0 : i32
    %c0_i32_1 = arith.constant 0 : i32
    return %arg1, %c0_i32, %c0_i32_0 : i32, i32, i32
  }
  func.func @transform_9(%arg0: i32, %arg1: i32) -> (i32, i32, i32) {
    %c0_i32 = arith.constant 0 : i32
    %c0_i32_0 = arith.constant 0 : i32
    %c0_i32_1 = arith.constant 0 : i32
    return %arg1, %c0_i32, %c0_i32_0 : i32, i32, i32
  }
  func.func @transform_10(%arg0: i32, %arg1: i32) -> (i32, i32, i32) {
    %c0_i32 = arith.constant 0 : i32
    %c0_i32_0 = arith.constant 0 : i32
    %c0_i32_1 = arith.constant 0 : i32
    return %arg1, %c0_i32, %c0_i32_0 : i32, i32, i32
  }
  func.func @transform_11(%arg0: i32, %arg1: i32) -> (i32, i32, i32) {
    %c0_i32 = arith.constant 0 : i32
    %c0_i32_0 = arith.constant 0 : i32
    %c0_i32_1 = arith.constant 0 : i32
    return %arg1, %c0_i32, %c0_i32_0 : i32, i32, i32
  }
  func.func @transform_12(%arg0: i32, %arg1: i32) -> (i32, i32, i32) {
    %c0_i32 = arith.constant 0 : i32
    %c0_i32_0 = arith.constant 0 : i32
    %c0_i32_1 = arith.constant 0 : i32
    return %arg1, %c0_i32, %c0_i32_0 : i32, i32, i32
  }
  func.func @transform_13(%arg0: i32, %arg1: i32) -> (i32, i32, i32) {
    %c0_i32 = arith.constant 0 : i32
    %c0_i32_0 = arith.constant 0 : i32
    %c0_i32_1 = arith.constant 0 : i32
    return %arg1, %c0_i32, %c0_i32_0 : i32, i32, i32
  }
  func.func @transform_14(%arg0: i32, %arg1: i32) -> (i32, i32, i32) {
    %c0_i32 = arith.constant 0 : i32
    %c0_i32_0 = arith.constant 0 : i32
    %c0_i32_1 = arith.constant 0 : i32
    return %arg1, %c0_i32, %c0_i32_0 : i32, i32, i32
  }
  func.func @transform_15(%arg0: i32, %arg1: i32) -> (i32, i32, i32) {
    %c0_i32 = arith.constant 0 : i32
    %c0_i32_0 = arith.constant 0 : i32
    %c0_i32_1 = arith.constant 0 : i32
    return %arg1, %c0_i32, %c0_i32_0 : i32, i32, i32
  }
  func.func @transform_16(%arg0: i32, %arg1: i32) -> (i32, i32, i32) {
    %c0_i32 = arith.constant 0 : i32
    %c0_i32_0 = arith.constant 0 : i32
    %c0_i32_1 = arith.constant 0 : i32
    return %arg1, %c0_i32, %c0_i32_0 : i32, i32, i32
  }
  func.func @transform_17(%arg0: i32, %arg1: i32) -> (i32, i32, i32) {
    %c0_i32 = arith.constant 0 : i32
    %c0_i32_0 = arith.constant 0 : i32
    %c0_i32_1 = arith.constant 0 : i32
    return %arg0, %c0_i32, %c0_i32_0 : i32, i32, i32
  }
}

</mosaic_0001>

<bundles_post_ra>
// kernel: tpu_custom_call.1
= control target key start
LH: loop header
LB: loop body
LE: loop exit
PB: predicated region body
PF: predicated region fallthrough
CT: control target
= control target key end

     0   :  { %s5278_s0 = inlined_call_operand.hbm [shape: f32[2,16,128], index: 0, kind: input, shape index: {}]   ;;  %s5279_s1 = inlined_call_operand.hbm [shape: f32[2,1,128], index: 1, kind: input, shape index: {}]   ;;  %s5280_s2 = inlined_call_operand.hbm [shape: f32[2,1,128], index: 2, kind: input, shape index: {}]   ;;  %s5281_s3 = inlined_call_operand.hbm [shape: bf16[2,128,128], index: 3, kind: input, shape index: {}]   ;;  %s5282_s4 = inlined_call_operand.vmem [shape: f32[2,1,128], index: 4, kind: input, shape index: {}]   ;;  %s5283_s5 = inlined_call_operand.hbm [shape: bf16[2,128,128], index: 5, kind: input, shape index: {}]   ;;  %s5284_s6 = inlined_call_operand.vmem [shape: f32[2,1,128], index: 6, kind: input, shape index: {}]   ;;  %s5285_s7 = inlined_call_operand.hbm [shape: bf16[2,128,128], index: 7, kind: input, shape index: {}]   ;;  %s5286_s8 = inlined_call_operand.hbm [shape: f32[2,1,128], index: 8, kind: input, shape index: {}]   ;;  %s5287_s9 = inlined_call_operand.hbm [shape: bf16[2,128,128], index: 9, kind: input, shape index: {}]   ;;  %s5288_s10 = inlined_call_operand.hbm [shape: f32[2,1,128], index: 10, kind: input, shape index: {}]   ;;  %s5289_s11 = inlined_call_operand.hbm [shape: f32[2,1,128], index: 11, kind: input, shape index: {}]   ;;  %s5290_s12 = inlined_call_operand.hbm [shape: f32[2,1,128], index: 12, kind: input, shape index: {}]   ;;  %s5291_s13 = inlined_call_operand.hbm [shape: bf16[2,128,512], index: 13, kind: input, shape index: {}]   ;;  %s5292_s14 = inlined_call_operand.vmem [shape: f32[2,1,512], index: 14, kind: input, shape index: {}]   ;;  %s5293_s15 = inlined_call_operand.hbm [shape: bf16[2,512,128], index: 15, kind: input, shape index: {}]   ;;  %s5294_s16 = inlined_call_operand.vmem [shape: f32[2,1,128], index: 16, kind: input, shape index: {}]   ;;  %s5295_s17 = inlined_call_operand.hbm [shape: f32[2,16,128], index: 17, kind: output, shape index: {}]  }
   0x1   :  { %5328 = sst [smem:[#allocation49_spill]] %s5278_s0 }
   0x2   :  { %5329 = sst [smem:[#allocation50_spill]] %s5279_s1 }
   0x3   :  { %5330 = sst [smem:[#allocation51_spill]] %s5280_s2 }
   0x4   :  { %5331 = sst [smem:[#allocation52_spill]] %s5281_s3 }
   0x5   :  { %5332 = sst [smem:[#allocation53_spill]] %s5282_s4 }
   0x6   :  { %5333 = sst [smem:[#allocation54_spill]] %s5283_s5 }
   0x7   :  { %5334 = sst [smem:[#allocation55_spill]] %s5284_s6 }
   0x8   :  { %5335 = sst [smem:[#allocation56_spill]] %s5285_s7 }
   0x9   :  { %5336 = sst [smem:[#allocation57_spill]] %s5286_s8 }
   0xa   :  { %5337 = sst [smem:[#allocation58_spill]] %s5287_s9 }
   0xb   :  { %5338 = sst [smem:[#allocation59_spill]] %s5288_s10 }
   0xc   :  { %5339 = sst [smem:[#allocation60_spill]] %s5289_s11 }
   0xd   :  { %5340 = sst [smem:[#allocation61_spill]] %s5290_s12 }
   0xe   :  { %5341 = sst [smem:[#allocation62_spill]] %s5291_s13 }
   0xf   :  { %5342 = sst [smem:[#allocation63_spill]] %s5292_s14 }
  0x10   :  { %5343 = sst [smem:[#allocation64_spill]] %s5293_s15 }
  0x11   :  { %5344 = sst [smem:[#allocation65_spill]] %s5294_s16 }
  0x12   :  { %5345 = sst [smem:[#allocation66_spill]] %s5295_s17 }
  0x13   :  { %22 = vsyncpa [#allocation3], 0 }
  0x14   :  { %24 = vsyncpa [#allocation3 + $0x1], 0 }
  0x15   :  { %25 = vsyncpa [#allocation6], 0 }
  0x16   :  { %27 = vsyncpa [#allocation6 + $0x1], 0 }
  0x17   :  { %28 = vsyncpa [#allocation9], 0 }
  0x18   :  { %30 = vsyncpa [#allocation9 + $0x1], 0 }
  0x19   :  { %31 = vsyncpa [#allocation12], 0 }
  0x1a   :  { %33 = vsyncpa [#allocation12 + $0x1], 0 }
  0x1b   :  { %34 = vsyncpa [#allocation15], 0 }
  0x1c   :  { %36 = vsyncpa [#allocation15 + $0x1], 0 }
  0x1d   :  { %37 = vsyncpa [#allocation18], 0 }
  0x1e   :  { %39 = vsyncpa [#allocation18 + $0x1], 0 }
  0x1f   :  { %40 = vsyncpa [#allocation21], 0 }
  0x20   :  { %42 = vsyncpa [#allocation21 + $0x1], 0 }
  0x21   :  { %43 = vsyncpa [#allocation4], 0 }
  0x22   :  { %45 = vsyncpa [#allocation4 + $0x1], 0  ;;  %s4393_s24 = smov 0   ;;  %s4395_s25 = smov 0  }
  0x23   :  { %s4397_s26 = smov 0   ;;  %s4399_s27 = smov 0  }
  0x24   :  { %s4401_s28 = smov 0   ;;  %s4403_s29 = smov 0  }
  0x25   :  { %s4405_s0 = smov 0   ;;  %s4407_s30 = smov 0  }
  0x26   :  { %s4409_s18 = smov 0   ;;  %s4411_s19 = smov 0  }
  0x27   :  { %s4413_s1 = smov 0  }
  0x28 LB: > { %5346 = sst [smem:[#allocation32_spill]] %s4253_s25  ;;  %s4449_s20 = sadd.s32 4294967295, %s4289_s1   ;;  %s4289_s1 = sphi %s4413_s1, %s51_s1   ;;  %s4285_s19 = sphi %s4411_s19, %s5439_s19   ;;  %s4281_s18 = sphi %s4409_s18, %s5443_s18   ;;  %s4277_s30 = sphi %s4407_s30, %s5437_s30   ;;  %s4273_s0 = sphi %s4405_s0, %s5442_s0   ;;  %s4269_s29 = sphi %s4403_s29, %s5441_s29   ;;  %s4265_s28 = sphi %s4401_s28, %s5440_s28   ;;  %s4261_s27 = sphi %s4399_s27, %s5435_s27   ;;  %s4257_s26 = sphi %s4397_s26, %s5434_s26   ;;  %s4253_s25 = sphi %s4395_s25, %s5433_s25   ;;  %s4249_s24 = sphi %s4393_s24, %s5432_s24  }
  0x29   : > { %5347 = sst [smem:[#allocation33_spill]] %s4257_s26  ;;  %s3004_s21 = sadd.s32 4294967294, %s4289_s1  }
  0x2a   : > { %5348 = sst [smem:[#allocation34_spill]] %s4261_s27  ;;  %s60_s22 = sadd.s32 1, %s4281_s18 }
  0x2b   : > { %5349 = sst [smem:[#allocation35_spill]] %s4265_s28  ;;  %s63_s23 = sadd.s32 1, %s4285_s19 }
  0x2c   : > { %5350 = sst [smem:[#allocation36_spill]] %s4273_s0  ;;  %p61_p0 = scmp.ge.s32.totalorder %s60_s22, 2 }
  0x2d   : > { %5351 = sst [smem:[#allocation37_spill]] %s4277_s30  ;;  %s70_s17 = sadd.s32 1, %s4269_s29 }
  0x2e   : > { %5352 = sst [smem:[#allocation38_spill]] %s4285_s19  ;;  %p77_p1 = scmp.ne.s32.totalorder %s4269_s29, %s4265_s28 }
  0x2f   : > { %5353 = sst [smem:[#allocation39_spill]] %s4289_s1  ;;  %p78_p2 = scmp.eq.s32.totalorder %s4289_s1, 0 }
  0x30   : > { %5354 = sst [smem:[#allocation40_spill]] %s4449_s20  ;;  %s5445_s22 = smov (%p61_p0, %s60_s22), 0 }
  0x31   : > { %5355 = sst [smem:[#allocation41_spill]] %s5445_s22  ;;  %s5447_s23 = smov (!%p61_p0, %s63_s23), %s4285_s19 }
  0x32   : > { %p4466_p3 = por %p78_p2, %p77_p1  ;;  %p5299_p4 = scmp.ne.s32.totalorder %s4265_s28, %s4261_s27 }
  0x33   : > { %p65_p5 = scmp.ge.s32.totalorder %s5447_s23, 2  ;;  %p84_p6 = scmp.eq.s32.totalorder %s4449_s20, 0 }
  0x34   : > { %s93_s14 = ssub.s32 %s4281_s18, %s5445_s22  ;;  %s96_s16 = sadd.s32 1, %s4257_s26 }
  0x35   : > { %s5449_s23 = smov (%p65_p5, %s5447_s23), 0  ;;  %p4483_p7 = por %p84_p6, %p5299_p4 }
  0x36   : > { %5357 = sst [smem:[#allocation42_spill]] %s5449_s23  ;;  %p94_p8 = scmp.eq.s32.totalorder %s93_s14, 0 }
  0x37   : > { %s5358_s6 = scalar_select %p4483_p7, 1, 0 }
  0x38   : > { %s67_s4 = ssub.s32 %s4285_s19, %s5449_s23  ;;  %p103_p9 = scmp.ne.s32.totalorder %s4257_s26, %s4253_s25 }
  0x39   : > { %5359 = sst [smem:[#allocation43_spill]] %s5358_s6  ;;  %p68_p10 = scmp.eq.s32.totalorder %s67_s4, 0 }
  0x3a   : > { %p109_p11 = scmp.ne.s32.totalorder %s4253_s25, %s4249_s24  ;;  %p4501_p12 = por %p103_p9, %p78_p2 }
  0x3b   : > { %s4494_s0 = scalar_select %p94_p8, %s4257_s26, %s96_s16  }
  0x3c   : > { %s4497_s22 = scalar_select %p68_p10, %s4269_s29, %s70_s17  }
  0x3d   : > { %5360 = sst [smem:[#allocation44_spill]] %s4494_s0  ;;  %p4507_p13 = por %p109_p11, %p84_p6 }
  0x3e   : > { %5361 = sst [smem:[#allocation45_spill]] %s4497_s22  ;;  %p523_p0 = scmp.eq.s32.totalorder %s4449_s20, 3 }
  0x3f   : > { %s5363_s10 = scalar_select %p4507_p13, 1, 0 }
  0x40   : > { %p529_p5 = scmp.eq.s32.totalorder %s3004_s21, 3  ;;  %p4515_p4 = por %p523_p0, %p77_p1 }
  0x41   : > { %5364 = sst [smem:[#allocation46_spill]] %s5363_s10  ;;  %p5367_p8 = scmp.ne.s32.totalorder %s4265_s28, %s4261_s27 }
  0x42   : > { %s5365_s4 = scalar_select %p4515_p4, 1, 0 }
  0x43   : > { %p4522_p10 = por %p529_p5, %p5367_p8  ;;  %p3006_p2 = scmp.ge.s32.totalorder %s4289_s1, 4 }
  0x44   : > { %5366 = sst [smem:[#allocation47_spill]] %s5365_s4  ;;  %s4528_s16 = sand.u32 (!%p3006_p2), 1, %s4289_s1  }
  0x45   : > { %s5368_s14 = scalar_select %p4522_p10, 1, 0 }
  0x46   : > { %545 = sbr.rel (%p3006_p2) target bundleno = 132 (0x84), region = 16  ;;  %s4531_s17 = sand.u32 (!%p3006_p2), 1, %s4257_s26  }
  0x47   : > { %5369 = sst [smem:[#allocation48_spill]] %s5368_s14  ;;  %s574_s0 = scalar_lea.vmem (!%p3006_p2), [#allocation5], %s4531_s17 }
  0x48   : > { %s5370_s23 = sld [smem:[#allocation50_spill]] (!%p3006_p2)  ;;  %s581_s14 = sshll.u32 (!%p3006_p2), %s574_s0, 4  ;;  %s582_s14 = int_to_ptr.vmem [resolvable:$true] %s581_s14 }
  0x49   : > { %s5309_s4 = scalar_lea.sflag (!%p3006_p2), [#allocation6], %s4528_s16  ;;  %s4544_s26 = sshll.u32 (!%p3006_p2), %s4531_s17, 6 }
  0x4a   : > { %s4547_s24 = sshll.u32 (!%p3006_p2), %s4281_s18, 6  ;;  %s5371_s3 = sld [smem:[#allocation52_spill]] (!%p3006_p2) }
  0x4b   : > { %s609_s10 = scalar_lea.vmem [#allocation8], %s4544_s26  ;;  %s5372_s7 = sld [smem:[#allocation56_spill]] }
  0x4c   : > { %s617_s25 = sshll.u32 %s609_s10, 4  ;;  %s665_s10 = scalar_lea.vmem [#allocation11], %s4544_s26  ;;  %s618_s25 = int_to_ptr.vmem [resolvable:$true] %s617_s25 }
  0x4d   : > { %s5314_s6 = scalar_lea.sflag [#allocation12], %s4528_s16  ;;  %s5373_s9 = sld [smem:[#allocation58_spill]] }
  0x4e   : > { %s577_s22 = scalar_lea.hbm %s5370_s23, %s4281_s18  ;;  %s5374_s11 = sld [smem:[#allocation60_spill]] }
  0x4f   : > { %s579_s27 = sshll.u32 %s577_s22, 4  ;;  %s5375_s13 = sld [smem:[#allocation62_spill]]  ;;  %s580_s27 = int_to_ptr.hbm [resolvable:$true] %s579_s27 }
  0x50   : > { %3549 = dma.hbm_to_vmem [thread:$0]  (%p4501_p12), %s580_s27, 16, %s582_s14, %s5309_s4  }
  0x51   : > { %s614_s0 = scalar_lea.hbm %s5371_s3, %s4547_s24  ;;  %s5313_s27 = scalar_lea.sflag [#allocation9], %s4528_s16 }
  0x52   : > { %s615_s22 = sshll.u32 %s614_s0, 4  ;;  %s5316_s14 = smov 64   ;;  %s616_s22 = int_to_ptr.hbm [resolvable:$true] %s615_s22 }
  0x53   : > { %s5318_s4 = smov 4   ;;  %s670_s0 = scalar_lea.hbm %s5372_s7, %s4547_s24 }
  0x54   : > { %3551 = dma.hbm_to_vmem [thread:$0]  (%p4501_p12), %s616_s22, 1024, %s618_s25, %s5313_s27, %s5316_s14, %s5316_s14, %s5318_s4  }
  0x55   : > { %s673_s3 = sshll.u32 %s665_s10, 4  ;;  %s671_s20 = sshll.u32 %s670_s0, 4  ;;  %s674_s3 = int_to_ptr.vmem [resolvable:$true] %s673_s3  ;;  %s672_s20 = int_to_ptr.hbm [resolvable:$true] %s671_s20 }
  0x56   : > { %3553 = dma.hbm_to_vmem [thread:$0]  (%p4501_p12), %s672_s20, 1024, %s674_s3, %s5314_s6, %s5316_s14, %s5316_s14, %s5318_s4  }
  0x57   : > { %s709_s23 = scalar_lea.hbm %s5373_s9, %s4547_s24  ;;  %s704_s0 = scalar_lea.vmem [#allocation14], %s4544_s26 }
  0x58   : > { %s710_s21 = sshll.u32 %s709_s23, 4  ;;  %s712_s10 = sshll.u32 %s704_s0, 4  ;;  %s711_s21 = int_to_ptr.hbm [resolvable:$true] %s710_s21  ;;  %s713_s10 = int_to_ptr.vmem [resolvable:$true] %s712_s10 }
  0x59   : > { %s5315_s27 = scalar_lea.sflag [#allocation15], %s4528_s16  ;;  %s745_s25 = scalar_lea.hbm %s5374_s11, %s4281_s18 }
  0x5a   : > { %3555 = dma.hbm_to_vmem [thread:$0]  (%p4501_p12), %s711_s21, 1024, %s713_s10, %s5315_s27, %s5316_s14, %s5316_s14, %s5318_s4  }
  0x5b   : > { %s742_s22 = scalar_lea.vmem [#allocation17], %s4531_s17  ;;  %s747_s23 = sshll.u32 %s745_s25, 4  ;;  %s748_s23 = int_to_ptr.hbm [resolvable:$true] %s747_s23 }
  0x5c   : > { %s749_s6 = sshll.u32 %s742_s22, 4  ;;  %s5320_s0 = scalar_lea.sflag [#allocation18], %s4528_s16  ;;  %s750_s6 = int_to_ptr.vmem [resolvable:$true] %s749_s6 }
  0x5d   : > { %3557 = dma.hbm_to_vmem [thread:$0]  (%p4501_p12), %s748_s23, 16, %s750_s6, %s5320_s0  }
  0x5e   : > { %s3022_s7 = sshll.u32 %s4531_s17, 8  ;;  %s3449_s9 = sshll.u32 %s4281_s18, 8 }
  0x5f   : > { %s782_s3 = scalar_lea.hbm %s5375_s13, %s3449_s9  ;;  %s777_s27 = scalar_lea.vmem [#allocation20], %s3022_s7 }
  0x60   : > { %s783_s20 = sshll.u32 %s782_s3, 4  ;;  %s785_s22 = sshll.u32 %s777_s27, 4  ;;  %s784_s20 = int_to_ptr.hbm [resolvable:$true] %s783_s20  ;;  %s786_s22 = int_to_ptr.vmem [resolvable:$true] %s785_s22 }
  0x61   : > { %s5325_s25 = scalar_lea.sflag [#allocation21], %s4528_s16  ;;  %s4293_s14 = smov 256  }
  0x62   : > { %s4294_s4 = smov 16   ;;  %s5376_s15 = sld [smem:[#allocation64_spill]] }
  0x63   : > { %3559 = dma.hbm_to_vmem [thread:$0]  (%p4501_p12), %s784_s20, 4096, %s786_s22, %s5325_s25, %s4293_s14, %s4293_s14, %s4294_s4  }
  0x64   : > { %s4614_s10 = scalar_lea.vmem [#allocation22], %s3022_s7  ;;  %s549_s3 = sand.u32 1, %s4269_s29  }
  0x65   : > { %s814_s27 = sshll.u32 %s4614_s10, 4  ;;  %s3444_s11 = sshll.u32 %s4285_s19, 4  ;;  %s815_s27 = int_to_ptr.vmem [resolvable:$true] %s814_s27 }
  0x66   : > { %s3007_s13 = sshll.u32 %s549_s3, 4  ;;  %s5377_s4 = sld [smem:[#allocation49_spill]] }
  0x67   : > { %s553_s20 = scalar_lea.vmem [#allocation2], %s3007_s13  ;;  %s550_s7 = scalar_lea.sflag [#allocation3], %s549_s3 }
  0x68   : > { %s4611_s0 = scalar_lea.hbm %s5376_s15, %s3449_s9  ;;  %s561_s22 = sshll.u32 %s553_s20, 4  ;;  %s562_s22 = int_to_ptr.vmem [resolvable:$true] %s561_s22 }
  0x69   : > { %s812_s21 = sshll.u32 %s4611_s0, 4  ;;  %s4295_s6 = smov 128   ;;  %s813_s21 = int_to_ptr.hbm [resolvable:$true] %s812_s21 }
  0x6a   : > { %s4296_s23 = smov 8   ;;  %s5378_s2 = sld [smem:[#allocation51_spill]] }
  0x6b   : > { %s5379_s3 = scalar_lea.sflag [#allocation6], %s4528_s16  ;;  %s5380_s5 = sld [smem:[#allocation54_spill]] }
  0x6c   : > { %s558_s14 = scalar_lea.hbm %s5377_s4, %s3444_s11  ;;  %s591_s4 = scalar_lea.vmem [#allocation7], %s4531_s17 }
  0x6d   : > { %s559_s9 = sshll.u32 %s558_s14, 4  ;;  %s598_s13 = sshll.u32 %s591_s4, 4  ;;  %s560_s9 = int_to_ptr.hbm [resolvable:$true] %s559_s9  ;;  %s599_s13 = int_to_ptr.vmem [resolvable:$true] %s598_s13 }
  0x6e   : > { %3548 = dma.hbm_to_vmem [thread:$0]  (%p4466_p3), %s560_s9, 256, %s562_s22, %s550_s7, %s4295_s6, %s4295_s6, %s4296_s23  }
  0x6f   : > { %s637_s25 = scalar_lea.vmem [#allocation10], %s4544_s26  ;;  %s5381_s7 = smov 4  }
  0x70   : > { %s594_s11 = scalar_lea.hbm %s5378_s2, %s4281_s18  ;;  %s645_s22 = sshll.u32 %s637_s25, 4  ;;  %s646_s22 = int_to_ptr.vmem [resolvable:$true] %s645_s22 }
  0x71   : > { %s596_s1 = sshll.u32 %s594_s11, 4  ;;  %s642_s9 = scalar_lea.hbm %s5380_s5, %s4547_s24  ;;  %s597_s1 = int_to_ptr.hbm [resolvable:$true] %s596_s1 }
  0x72   : > { %3550 = dma.hbm_to_vmem [thread:$0]  (%p4501_p12), %s597_s1, 16, %s599_s13, %s5379_s3  }
  0x73   : > { %s643_s20 = sshll.u32 %s642_s9, 4  ;;  %s5382_s6 = smov 64   ;;  %s644_s20 = int_to_ptr.hbm [resolvable:$true] %s643_s20 }
  0x74   : > { %s5383_s23 = scalar_lea.sflag [#allocation9], %s4528_s16  ;;  %s5384_s8 = sld [smem:[#allocation57_spill]] }
  0x75   : > { %3552 = dma.hbm_to_vmem [thread:$0]  (%p4501_p12), %s644_s20, 1024, %s646_s22, %s5383_s23, %s5382_s6, %s5382_s6, %s5381_s7  }
  0x76   : > { %s686_s4 = scalar_lea.vmem [#allocation13], %s4531_s17  ;;  %s5385_s13 = scalar_lea.sflag [#allocation12], %s4528_s16 }
  0x77   : > { %s693_s26 = sshll.u32 %s686_s4, 4  ;;  %s5386_s30 = sld [smem:[#allocation59_spill]]  ;;  %s694_s26 = int_to_ptr.vmem [resolvable:$true] %s693_s26 }
  0x78   : > { %s725_s25 = scalar_lea.vmem [#allocation16], %s4531_s17  ;;  %s5387_s23 = scalar_lea.sflag [#allocation15], %s4528_s16 }
  0x79   : > { %s732_s22 = sshll.u32 %s725_s25, 4  ;;  %s5389_s3 = scalar_lea.sflag [#allocation18], %s4528_s16  ;;  %s733_s22 = int_to_ptr.vmem [resolvable:$true] %s732_s22 }
  0x7a   : > { %s689_s1 = scalar_lea.hbm %s5384_s8, %s4281_s18  ;;  %s5390_s14 = scalar_lea.sflag [#allocation21], %s4528_s16 }
  0x7b   : > { %s691_s24 = sshll.u32 %s689_s1, 4  ;;  %s5388_s1 = sld [smem:[#allocation61_spill]]  ;;  %s692_s24 = int_to_ptr.hbm [resolvable:$true] %s691_s24 }
  0x7c   : > { %3554 = dma.hbm_to_vmem [thread:$0]  (%p4501_p12), %s692_s24, 16, %s694_s26, %s5385_s13  }
  0x7d   : > { %s728_s9 = scalar_lea.hbm %s5386_s30, %s4281_s18  ;;  %s759_s26 = scalar_lea.vmem [#allocation19], %s4531_s17 }
  0x7e   : > { %s730_s20 = sshll.u32 %s728_s9, 4  ;;  %s766_s13 = sshll.u32 %s759_s26, 4  ;;  %s731_s20 = int_to_ptr.hbm [resolvable:$true] %s730_s20  ;;  %s767_s13 = int_to_ptr.vmem [resolvable:$true] %s766_s13 }
  0x7f   : > { %3556 = dma.hbm_to_vmem [thread:$0]  (%p4501_p12), %s731_s20, 16, %s733_s22, %s5387_s23  }
  0x80   : > { %3560 = dma.hbm_to_vmem [thread:$0]  (%p4501_p12), %s813_s21, 4096, %s815_s27, %s5390_s14, %s5382_s6, %s5382_s6, %s5381_s7  }
  0x81   : > { %s762_s4 = scalar_lea.hbm %s5388_s1, %s4281_s18 }
  0x82   : > { %s764_s24 = sshll.u32 %s762_s4, 4  ;;  %s765_s24 = int_to_ptr.hbm [resolvable:$true] %s764_s24 }
  0x83   : > { %3558 = dma.hbm_to_vmem [thread:$0]  (%p4501_p12), %s765_s24, 16, %s767_s13, %s5389_s3  }
  0x84 PF: > { %s5391_s30 = sld [smem:[#allocation39_spill]] }
  0x8a   : > { %p3028_p1 = scmp.ge.s32.totalorder %s5391_s30, 1  ;;  %p828_p3 = scmp.lt.s32.totalorder %s5391_s30, 5 }
  0x8c   : > { %p829_p6 = pnand %p3028_p1, %p828_p3 }
  0x8d   : > { %s5392_s17 = sld [smem:[#allocation35_spill]] (!%p829_p6) }
  0x8e   : > { %832 = sbr.rel (%p829_p6) target bundleno = 2454 (0x996), region = 88 }
  0x93   : > { %s4686_s20 = sand.u32 1, %s5392_s17  }
  0x94   : > { %s5326_s12 = sshll.u32 %s4686_s20, 4  ;;  %s835_s0 = scalar_lea.sflag [#allocation3], %s4686_s20 }
  0x95   : > { %s4692_s10 = scalar_lea.vmem [#allocation2], %s5326_s12 }
  0x96   : > { %4216 = dma.done.wait (%p4483_p7), %s835_s0, 256  }
  0x97   : > { %4218 = vsyncadd (%p4483_p7), %s835_s0, 4294967040  ;;  %s5394_s16 = sld [smem:[#allocation40_spill]] }
  0x98   : > { %s5395_s21 = sld [smem:[#allocation32_spill]] }
  0x9d   : > { %s4699_s7 = sand.u32 1, %s5394_s16  }
  0x9e   : > { %s4702_s6 = sand.u32 1, %s5395_s21   ;;  %s845_s25 = scalar_lea.sflag [#allocation6], %s4699_s7 }
  0x9f   : > { %4220 = dma.done.wait (%p4507_p13), %s845_s25, 32  }
  0xa0   : > { %4222 = vsyncadd (%p4507_p13), %s845_s25, 4294967264  ;;  %s3030_s23 = sshll.u32 %s4702_s6, 6  ;;  %s863_s11 = scalar_lea.sflag [#allocation9], %s4699_s7 }
  0xa1   : > { %s4713_s1 = scalar_lea.vmem [#allocation8], %s3030_s23 }
  0xa2   : > { %4224 = dma.done.wait (%p4507_p13), %s863_s11, 2048  }
  0xa3   : > { %4226 = vsyncadd (%p4507_p13), %s863_s11, 4294965248  ;;  %s4719_s4 = scalar_lea.vmem [#allocation10], %s3030_s23  ;;  %s883_s24 = scalar_lea.sflag [#allocation12], %s4699_s7 }
  0xa4   : > { %s4722_s26 = scalar_lea.vmem [#allocation11], %s3030_s23 }
  0xa5   : > { %4228 = dma.done.wait (%p4507_p13), %s883_s24, 1040  }
  0xa6   : > { %4230 = vsyncadd (%p4507_p13), %s883_s24, 4294966256  ;;  %s902_s3 = scalar_lea.sflag [#allocation15], %s4699_s7  ;;  %s4730_s14 = scalar_lea.vmem [#allocation14], %s3030_s23 }
  0xa7   : > { %4232 = dma.done.wait (%p4507_p13), %s902_s3, 1040  }
  0xa8   : > { %4234 = vsyncadd (%p4507_p13), %s902_s3, 4294966256  ;;  %s921_s17 = scalar_lea.sflag [#allocation18], %s4699_s7 }
  0xa9   : > { %4236 = dma.done.wait (%p4507_p13), %s921_s17, 32  }
  0xaa   : > { %4238 = vsyncadd (%p4507_p13), %s921_s17, 4294967264  ;;  %s3034_s0 = sshll.u32 %s4702_s6, 8  ;;  %s939_s21 = scalar_lea.sflag [#allocation21], %s4699_s7 }
  0xab   : > { %s4746_s25 = scalar_lea.vmem [#allocation20], %s3034_s0 }
  0xac   : > { %4240 = dma.done.wait (%p4507_p13), %s939_s21, 8192  }
  0xad   : > { %4242 = vsyncadd (%p4507_p13), %s939_s21, 4294959104  ;;  %s5397_s23 = sld [smem:[#allocation36_spill]]  ;;  %s4774_s19 = scalar_lea.vmem [#allocation22], %s3034_s0 }
  0xae   : > { %s5398_s17 = sld [smem:[#allocation53_spill]]  ;;  %s5402_s24 = sshll.u32 %s4686_s20, 4 }
  0xaf   : > { %s5399_s30 = sld [smem:[#allocation55_spill]]  ;;  %s4778_s3 = scalar_lea.vmem [#allocation23], %s5402_s24 }
  0xb0   : > { %s5400_s22 = sld [smem:[#allocation65_spill]] }
  0xb1   : > { %s5401_s8 = sld [smem:[#allocation63_spill]] }
  0xb3   : > { %p1071_p7 = scmp.lt.s32.totalorder %s5397_s23, 1  ;;  %p3038_p9 = scmp.ne.s32.totalorder %s5397_s23, 0 }
  0xb5   : > { %s4754_s11 = scalar_select %p1071_p7, %s5397_s23, 1 }
  0xb6   : > { %1088 = sbr.rel (%p3038_p9) target bundleno = 190 (0xbe), region = 144 }
  0xb7   : > { %s1073_s7 = scalar_lea.vmem %s5398_s17, %s4754_s11  ;;  %s1076_s13 = scalar_lea.vmem %s5399_s30, %s4754_s11 }
  0xb8   : > { %s3037_s27 = sshll.u32 %s4754_s11, 2  ;;  %s1083_s12 = scalar_lea.vmem %s5400_s22, %s4754_s11 }
  0xb9   : > { %s4772_s15 = scalar_lea.vmem %s5401_s8, %s3037_s27 }
  0xbb   : > { %v1089_v0 = vld [vmem:[%s4692_s10] sm:$0xff]  ;;  %v1090_v1 = vld [vmem:[%s4692_s10 + $0x8] sm:$0xff] }
  0xbc   : > { %1091 = vst [vmem:[%s4778_s3] sm:$0xff] %v1089_v0 }
  0xbd   : > { %1092 = vst [vmem:[%s4778_s3 + $0x8] sm:$0xff] %v1090_v1 }
  0xbe PF: > { %v4297_v4 = vmov 128.0   ;;  %v3458_v19 = vld [vmem:[%s4713_s1 + $0x38] sm:$0xff]  ;;  %v3457_v22 = vld [vmem:[%s4713_s1 + $0x30] sm:$0xff]  ;;  %v3456_v25 = vld [vmem:[%s4713_s1 + $0x28] sm:$0xff]  ;;  %s5403_s2 = scalar_lea.vmem [#allocation5], %s4702_s6  ;;  %s5404_s5 = scalar_lea.vmem [#allocation7], %s4702_s6 }
  0xbf   : > { %3705 = vrcp.f32 %v4297_v4  ;;  %v3466_v20 = vld [vmem:[%s4719_s4 + $0x38] sm:$0xff]  ;;  %1223 = vmatpush.bf16.msra.mxu0 %v3458_v19  ;;  %v3465_v23 = vld [vmem:[%s4719_s4 + $0x30] sm:$0xff]  ;;  %v3464_v26 = vld [vmem:[%s4719_s4 + $0x28] sm:$0xff]  ;;  %vm1417_vm7 = vcmask 261120   ;;  %vm1438_vm8 = vcmask 130048   ;;  %s4299_s30 = smov 32  }
  0xc0   : > { %v3474_v21 = vld [vmem:[%s4722_s26 + $0x38] sm:$0xff]  ;;  %1305 = vmatpush.bf16.msra.mxu1 %v3466_v20  ;;  %v3473_v24 = vld [vmem:[%s4722_s26 + $0x30] sm:$0xff]  ;;  %v3472_v27 = vld [vmem:[%s4722_s26 + $0x28] sm:$0xff]  ;;  %s4300_s9 = smov 64   ;;  %vm1736_vm9 = vcmask 523264   ;;  %vm1739_vm10 = vcmask 785408  }
  0xc1   : > { %1387 = vmatpush.bf16.msra.mxu2 %v3474_v21  ;;  %v3455_v28 = vld [vmem:[%s4713_s1 + $0x20] sm:$0xff]  ;;  %v3454_v31 = vld [vmem:[%s4713_s1 + $0x18] sm:$0xff]  ;;  %v3453_v34 = vld [vmem:[%s4713_s1 + $0x10] sm:$0xff]  ;;  %s5409_s0 = scalar_lea.vmem [#allocation17], %s4702_s6  ;;  %s5410_s16 = scalar_lea.vmem [#allocation19], %s4702_s6 }
  0xc2   : > { %v3463_v29 = vld [vmem:[%s4719_s4 + $0x20] sm:$0xff]  ;;  %v3462_v32 = vld [vmem:[%s4719_s4 + $0x18] sm:$0xff]  ;;  %v3461_v35 = vld [vmem:[%s4719_s4 + $0x10] sm:$0xff]  ;;  %s2643_s21 = sshll.u32 %s4778_s3, 4  ;;  %s2644_s21 = int_to_ptr.vmem [resolvable:$true] %s2643_s21 }
  0xc3   : > { %v4786_v2 = vld [vmem:[%s4778_s3] sm:$0xff]  ;;  %1224 = vmatpush.bf16.msra.mxu0 %v3457_v22  ;;  %v3471_v30 = vld [vmem:[%s4722_s26 + $0x20] sm:$0xff]  ;;  %v3469_v36 = vld [vmem:[%s4722_s26 + $0x10] sm:$0xff] }
  0xc4   : > { %1097 = vadd.xlane.f32.xlu0 %v4786_v2  ;;  %v4790_v3 = vld [vmem:[%s4778_s3 + $0x8] sm:$0xff]  ;;  %1306 = vmatpush.bf16.msra.mxu1 %v3465_v23  ;;  %v3470_v33 = vld [vmem:[%s4722_s26 + $0x18] sm:$0xff]  ;;  %v3452_v37 = vld [vmem:[%s4713_s1 + $0x8] sm:$0xff] }
  0xc5   : > { %v3706_v5 = vpop.eup %3705  ;;  %1388 = vmatpush.bf16.msra.mxu2 %v3473_v24  ;;  %v3460_v38 = vld [vmem:[%s4719_s4 + $0x8] sm:$0xff]  ;;  %v3451_v41 = vld [vmem:[%s4713_s1] sm:$0xff]  ;;  %v3696_v62 = vld [vmem:[%s5403_s2] ss:$0 sm:$0xff]  ;;  %s2631_s2 = scalar_lea.sflag [#allocation4], %s4686_s20 }
  0xc6   : > { %v1102_v6 = vmul.f32 128.0, %v3706_v5  ;;  %vm1106_vm0 = vweird.f32 %v3706_v5  ;;  %v3468_v39 = vld [vmem:[%s4722_s26 + $0x8] sm:$0xff]  ;;  %v3459_v42 = vld [vmem:[%s4719_s4] sm:$0xff] }
  0xc7   : > { %1225 = vmatpush.bf16.msra.mxu0 %v3456_v25  ;;  %v3467_v44 = vld [vmem:[%s4722_s26] sm:$0xff]  ;;  %s5407_s26 = scalar_lea.vmem [#allocation13], %s4702_s6 }
  0xc8   : > { %v1103_v7 = vsub.f32 1.0, %v1102_v6  ;;  %1307 = vmatpush.bf16.msra.mxu1 %v3464_v26 }
  0xc9   : > { %1389 = vmatpush.bf16.msra.mxu2 %v3472_v27 }
  0xca   : > { %v1104_v8 = vmul.f32 %v3706_v5, %v1103_v7 }
  0xcb   : > { %1226 = vmatpush.bf16.msra.mxu0 %v3455_v28 }
  0xcc   : > { %1099 = vadd.xlane.f32.xlu0 %v4790_v3  ;;  %v1105_v9 = vadd.f32 %v3706_v5, %v1104_v8  ;;  %1308 = vmatpush.bf16.msra.mxu1 %v3463_v29 }
  0xcd   : > { %1390 = vmatpush.bf16.msra.mxu2 %v3471_v30 }
  0xce   : > { %v4793_v10 = vsel %vm1106_vm0, %v3706_v5, %v1105_v9  ;;  %v3697_v5 = vld [vmem:[%s5404_s5] ss:$0 sm:$0xff] }
  0xcf   : > { %1227 = vmatpush.bf16.msra.mxu0 %v3454_v31 }
  0xd0   : > { %1309 = vmatpush.bf16.msra.mxu1 %v3462_v32 }
  0xd1   : > { %1391 = vmatpush.bf16.msra.mxu2 %v3470_v33 }
  0xd3   : > { %1228 = vmatpush.bf16.msra.mxu0 %v3453_v34 }
  0xd4   : > { %1310 = vmatpush.bf16.msra.mxu1 %v3461_v35 }
  0xd5   : > { %1392 = vmatpush.bf16.msra.mxu2 %v3469_v36 }
  0xd7   : > { %1229 = vmatpush.bf16.msra.mxu0 %v3452_v37 }
  0xd8   : > { %1311 = vmatpush.bf16.msra.mxu1 %v3460_v38 }
  0xd9   : > { %1393 = vmatpush.bf16.msra.mxu2 %v3468_v39 }
  0xdb   : > { %1230 = vmatpush.bf16.msra.mxu0 %v3451_v41 }
  0xdc   : > { %1312 = vmatpush.bf16.msra.mxu1 %v3459_v42 }
  0xdd   : > { %1394 = vmatpush.bf16.msra.mxu2 %v3467_v44 }
 0x137   : > { %v1098_v11 = vpop.xlane.xlu0 %1097 }
 0x138   : > { %v1108_v12 = vmul.f32 %v4793_v10, %v1098_v11 }
 0x13a   : > { %v4797_v13 = vsub.f32 %v4786_v2, %v1108_v12 }
 0x13c   : > { %v1112_v14 = vmul.f32 %v4797_v13, %v4797_v13 }
 0x13e   : > { %1114 = vadd.xlane.f32.xlu1 %v1112_v14  ;;  %v3699_v14 = vld [vmem:[%s1076_s13] ss:$0 sm:$0xff]  ;;  %s4298_s13 = smov 96  }
 0x13f   : > { %v1100_v15 = vpop.xlane.xlu0 %1099 }
 0x140   : > { %v1109_v16 = vmul.f32 %v4793_v10, %v1100_v15 }
 0x142   : > { %v4803_v17 = vsub.f32 %v4790_v3, %v1109_v16 }
 0x144   : > { %v1113_v18 = vmul.f32 %v4803_v17, %v4803_v17 }
 0x146   : > { %1116 = vadd.xlane.f32.xlu1 %v1113_v18  ;;  %v3700_v18 = vld [vmem:[%s5407_s26] ss:$0 sm:$0xff] }
 0x1b1   : > { %v1115_v40 = vpop.xlane.xlu1 %1114 }
 0x1b2   : > { %v1118_v43 = vmul.f32 %v1115_v40, %v4793_v10 }
 0x1b4   : > { %v1120_v45 = vadd.f32 1e-05, %v1118_v43 }
 0x1b6   : > { %3707 = vrsqrt.f32 %v1120_v45  ;;  %vm1128_vm2 = vweird.f32 %v1120_v45 }
 0x1b9   : > { %v1117_v46 = vpop.xlane.xlu1 %1116 }
 0x1ba   : > { %v1119_v47 = vmul.f32 %v1117_v46, %v4793_v10 }
 0x1bc   : > { %v3708_v48 = vpop.eup %3707  ;;  %v1121_v49 = vadd.f32 1e-05, %v1119_v47 }
 0x1bd   : > { %v1123_v50 = vmul.f32 %v3708_v48, %v1120_v45  ;;  %vm1129_vm1 = vweird.f32 %v3708_v48 }
 0x1be   : > { %3709 = vrsqrt.f32 %v1121_v49  ;;  %vm1130_vm3 = vmor %vm1128_vm2, %vm1129_vm1  ;;  %vm1138_vm5 = vweird.f32 %v1121_v49 }
 0x1bf   : > { %v1124_v51 = vmul.f32 %v3708_v48, %v1123_v50 }
 0x1c1   : > { %v1125_v52 = vmul.f32 0.5, %v1124_v51 }
 0x1c3   : > { %v1126_v53 = vsub.f32 1.5, %v1125_v52 }
 0x1c4   : > { %v3710_v54 = vpop.eup %3709 }
 0x1c5   : > { %v1127_v55 = vmul.f32 %v3708_v48, %v1126_v53  ;;  %v1133_v56 = vmul.f32 %v3710_v54, %v1121_v49  ;;  %vm1139_vm4 = vweird.f32 %v3710_v54 }
 0x1c6   : > { %vm1140_vm6 = vmor %vm1138_vm5, %vm1139_vm4 }
 0x1c7   : > { %v1134_v57 = vmul.f32 %v3710_v54, %v1133_v56  ;;  %v1131_v58 = vsel %vm1130_vm3, %v3708_v48, %v1127_v55 }
 0x1c8   : > { %v1142_v61 = vmul.f32 %v1131_v58, %v4797_v13  ;;  %v3698_v13 = vld [vmem:[%s1073_s7] ss:$0 sm:$0xff] }
 0x1c9   : > { %v1135_v59 = vmul.f32 0.5, %v1134_v57 }
 0x1ca   : > { %v1147_v4 = vmul.f32 %v3696_v62, %v1142_v61 }
 0x1cb   : > { %v1136_v60 = vsub.f32 1.5, %v1135_v59 }
 0x1cc   : > { %v1152_v7 = vadd.f32 %v3697_v5, %v1147_v4 }
 0x1cd   : > { %v1137_v63 = vmul.f32 %v3710_v54, %v1136_v60 }
 0x1cf   : > { %v1141_v0 = vsel %vm1140_vm6, %v3710_v54, %v1137_v63 }
 0x1d0   : > { %v1143_v1 = vmul.f32 %v1141_v0, %v4803_v17 }
 0x1d2   : > { %v1148_v6 = vmul.f32 %v3696_v62, %v1143_v1 }
 0x1d4   : > { %v1153_v8 = vadd.f32 %v3697_v5, %v1148_v6 }
 0x1d6   : > { %v1154_v9 = vpack.c.bf16 %v1153_v8, %v1152_v7 }
 0x1d8   : > { %1231 = vmatmul.bf16.vlgmr.msra.gmra.mxu0 %v1154_v9  ;;  %1313 = vmatmul.bf16.vlgmr.msra.gmra.mxu1 %v1154_v9 }
 0x1d9   : > { %1395 = vmatmul.bf16.vlgmr.msra.gmra.mxu2 %v1154_v9 }
 0x255   : > { %v1232_v11 = vpop.f32.mrf.mxu0  ;;  %v1314_v12 = vpop.f32.mrf.mxu1 }
 0x256   : > { %v1233_v15 = vadd.f32 %v3698_v13, %v1232_v11  ;;  %v1315_v16 = vadd.f32 %v3699_v14, %v1314_v12 }
 0x258   : > { %v1401_v21 = vpack.c.bf16 %v1233_v15, %v1233_v15  ;;  %v1403_v22 = vpack.c.bf16 %v1315_v16, %v1315_v16 }
 0x25a   : > { %v1409_v28 = vunpack.c.l.b16 %v1401_v21  ;;  %v1414_v29 = vunpack.c.l.b16 %v1403_v22 }
 0x25c   : > { %v1396_v17 = vpop.f32.mrf.mxu2 }
 0x25d   : > { %v1234_v19 = vpop.f32.mrf.mxu0  ;;  %v1316_v20 = vpop.f32.mrf.mxu1  ;;  %v1397_v27 = vadd.f32 %v3700_v18, %v1396_v17 }
 0x25e   : > { %v1235_v23 = vadd.f32 %v3698_v13, %v1234_v19  ;;  %v1317_v24 = vadd.f32 %v3699_v14, %v1316_v20 }
 0x25f   : > { %v1405_v35 = vpack.c.bf16 %v1397_v27, %v1397_v27 }
 0x260   : > { %v1402_v25 = vpack.c.bf16 %v1235_v23, %v1235_v23  ;;  %v1404_v26 = vpack.c.bf16 %v1317_v24, %v1317_v24 }
 0x261   : > { %v1470_v39 = vunpack.c.l.b16 %v1405_v35 }
 0x262   : > { %v1410_v30 = vunpack.c.l.b16 %v1402_v25  ;;  %v1415_v31 = vunpack.c.l.b16 %v1404_v26 }
 0x264   : > { %v1411_v32 = vpack.c.b16 %v1410_v30, %v1409_v28  ;;  %v1416_v33 = vpack.c.b16 %v1415_v31, %v1414_v29  ;;  %v1398_v34 = vpop.f32.mrf.mxu2 }
 0x265   : > { %v1399_v36 = vadd.f32 %v3700_v18, %v1398_v34 }
 0x266   : > { %1491 = vrot.lane.b32.xlu0 %v1411_v32, %s4298_s13  ;;  %v1422_v37 = vsel %vm1417_vm7, %v1416_v33, 0 }
 0x267   : > { %v1406_v38 = vpack.c.bf16 %v1399_v36, %v1399_v36  ;;  %1431 = vmatpush.bf16.xpose.msra.mxu3 %v1422_v37 }
 0x269   : > { %v1471_v40 = vunpack.c.l.b16 %v1406_v38 }
 0x26b   : > { %v4853_v41 = vpack.c.b16 %v1471_v40, %v1470_v39 }
 0x26e   : > { %3135 = vmatmul.msk.bf16.vlgmr.msra.gmra.mxu3 %vm1417_vm7, %v1411_v32 }
 0x26f   : > { %1484 = vmatpush.bf16.msrb.mxu3 %v4853_v41 }
 0x2d8   : > { %v1492_v58 = vpop.permute.xlu0 %1491 }
 0x2f1   : > { %v1433_v42 = vpop.f32.mrf.mxu3 }
 0x2f2   : > { %v1439_v43 = vsel %vm1438_vm8, %v1433_v42, -inf }
 0x2f3   : > { %1440 = vmax.xlane.f32.xlu2 %v1439_v43 }
 0x2f9   : > { %v1435_v44 = vpop.f32.mrf.mxu3 }
 0x2fa   : > { %v1442_v45 = vsel %vm1438_vm8, %v1435_v44, -inf }
 0x2fb   : > { %1443 = vmax.xlane.f32.xlu2 %v1442_v45 }
 0x313   : > { %1493 = vrot.lane.b32.xlu2 %v1416_v33, %s4298_s13 }
 0x31b   : > { %1639 = vrot.lane.b32.xlu2 %v1416_v33, %s4299_s30 }
 0x323   : > { %1637 = vrot.lane.b32.xlu2 %v1411_v32, %s4299_s30 }
 0x366   : > { %v1441_v46 = vpop.xlane.xlu2 %1440 }
 0x367   : > { %v1445_v47 = vsub.f32 %v1433_v42, %v1441_v46 }
 0x369   : > { %v1447_v48 = vmul.f32 1.442695, %v1445_v47 }
 0x36b   : > { %3711 = vpow2.f32 %v1447_v48 }
 0x36e   : > { %v1444_v49 = vpop.xlane.xlu2 %1443 }
 0x36f   : > { %v1446_v50 = vsub.f32 %v1435_v44, %v1444_v49 }
 0x371   : > { %v3712_v51 = vpop.eup %3711  ;;  %v1449_v52 = vmul.f32 1.442695, %v1446_v50 }
 0x372   : > { %v1451_v53 = vsel %vm1438_vm8, %v3712_v51, 0.0 }
 0x373   : > { %3713 = vpow2.f32 %v1449_v52  ;;  %1452 = vadd.xlane.f32.xlu0 %v1451_v53 }
 0x376   : > { %v1494_v54 = vpop.permute.xlu2 %1493 }
 0x377   : > { %v1499_v55 = vsel %vm1417_vm7, %v1494_v54, 0 }
 0x378   : > { %1508 = vmatpush.bf16.xpose.msra.mxu3 %v1499_v55 }
 0x379   : > { %v3714_v56 = vpop.eup %3713 }
 0x37a   : > { %v1454_v57 = vsel %vm1438_vm8, %v3714_v56, 0.0 }
 0x37b   : > { %1455 = vadd.xlane.f32.xlu1 %v1454_v57 }
 0x37e   : > { %v1640_v7 = vpop.permute.xlu2 %1639 }
 0x37f   : > { %v1645_v9 = vsel %vm1417_vm7, %v1640_v7, 0 }
 0x386   : > { %v1638_v14 = vpop.permute.xlu2 %1637 }
 0x387   : > { %1564 = vrot.lane.b32.xlu0 %v1411_v32, %s4300_s9 }
 0x394   : > { %1566 = vrot.lane.b32.xlu1 %v1416_v33, %s4300_s9 }
 0x3e6   : > { %v1453_v59 = vpop.xlane.xlu0 %1452 }
 0x3e7   : > { %3715 = vrcp.f32 %v1453_v59 }
 0x3ed   : > { %v3716_v61 = vpop.eup %3715 }
 0x3ee   : > { %v1456_v60 = vpop.xlane.xlu1 %1455  ;;  %v1459_v62 = vmul.f32 %v3716_v61, %v3712_v51 }
 0x3ef   : > { %3717 = vrcp.f32 %v1456_v60 }
 0x3f0   : > { %v1461_v0 = vpack.c.bf16 %v1459_v62, %v1459_v62 }
 0x3f2   : > { %v1465_v5 = vunpack.c.l.b16 %v1461_v0 }
 0x3f5   : > { %v3718_v63 = vpop.eup %3717 }
 0x3f6   : > { %v1460_v1 = vmul.f32 %v3718_v63, %v3714_v56 }
 0x3f8   : > { %v1462_v4 = vpack.c.bf16 %v1460_v1, %v1460_v1 }
 0x3f9   : > { %v1565_v13 = vpop.permute.xlu0 %1564 }
 0x3fa   : > { %v1466_v6 = vunpack.c.l.b16 %v1462_v4 }
 0x3fc   : > { %v1467_v8 = vpack.c.b16 %v1466_v6, %v1465_v5 }
 0x3fe   : > { %3136 = vmatmul.msk.bf16.vlgmr.msrb.gmra.mxu3 %vm1438_vm8, %v1467_v8 }
 0x3ff   : > { %1654 = vmatpush.bf16.xpose.msrb.mxu3 %v1645_v9 }
 0x406   : > { %v1567_v11 = vpop.permute.xlu1 %1566 }
 0x407   : > { %v1572_v12 = vsel %vm1417_vm7, %v1567_v11, 0 }
 0x408   : > { %1581 = vmatpush.bf16.xpose.msrb.mxu2 %v1572_v12 }
 0x40e   : > { %3137 = vmatmul.msk.bf16.vlgmr.msra.gmra.mxu3 %vm1417_vm7, %v1492_v58 }
 0x40f   : > { %3139 = vmatmul.msk.bf16.vlgmr.msrb.gmra.mxu2 %vm1417_vm7, %v1565_v13 }
 0x41e   : > { %3141 = vmatmul.msk.bf16.vlgmr.msrb.gmra.mxu3 %vm1417_vm7, %v1638_v14 }
 0x481   : > { %v4873_v15 = vpop.f32.mrf.mxu3 }
 0x489   : > { %v4875_v16 = vpop.f32.mrf.mxu3 }
 0x491   : > { %v1510_v17 = vpop.f32.mrf.mxu3 }
 0x492   : > { %v1583_v18 = vpop.f32.mrf.mxu2  ;;  %v1515_v19 = vsel %vm1438_vm8, %v1510_v17, -inf }
 0x493   : > { %1516 = vmax.xlane.f32.xlu1 %v1515_v19  ;;  %v1588_v20 = vsel %vm1438_vm8, %v1583_v18, -inf }
 0x494   : > { %1589 = vmax.xlane.f32.xlu2 %v1588_v20 }
 0x499   : > { %v1512_v21 = vpop.f32.mrf.mxu3 }
 0x49a   : > { %v1585_v22 = vpop.f32.mrf.mxu2  ;;  %v1518_v23 = vsel %vm1438_vm8, %v1512_v21, -inf }
 0x49b   : > { %1519 = vmax.xlane.f32.xlu0 %v1518_v23  ;;  %v1591_v24 = vsel %vm1438_vm8, %v1585_v22, -inf }
 0x49c   : > { %1592 = vmax.xlane.f32.xlu1 %v1591_v24 }
 0x4a1   : > { %v1656_v25 = vpop.f32.mrf.mxu3 }
 0x4a2   : > { %v1661_v26 = vsel %vm1438_vm8, %v1656_v25, -inf }
 0x4a3   : > { %1662 = vmax.xlane.f32.xlu0 %v1661_v26 }
 0x4a9   : > { %v1658_v27 = vpop.f32.mrf.mxu3 }
 0x4aa   : > { %v1664_v28 = vsel %vm1438_vm8, %v1658_v27, -inf }
 0x4ab   : > { %1665 = vmax.xlane.f32.xlu2 %v1664_v28 }
 0x506   : > { %v1517_v29 = vpop.xlane.xlu1 %1516 }
 0x507   : > { %v1590_v30 = vpop.xlane.xlu2 %1589  ;;  %v1521_v39 = vsub.f32 %v1510_v17, %v1517_v29 }
 0x508   : > { %v1594_v31 = vsub.f32 %v1583_v18, %v1590_v30 }
 0x509   : > { %v1523_v43 = vmul.f32 1.442695, %v1521_v39 }
 0x50a   : > { %v1596_v32 = vmul.f32 1.442695, %v1594_v31 }
 0x50c   : > { %3719 = vpow2.f32 %v1596_v32 }
 0x50e   : > { %v1520_v33 = vpop.xlane.xlu0 %1519 }
 0x50f   : > { %v1522_v34 = vsub.f32 %v1512_v21, %v1520_v33  ;;  %v1593_v35 = vpop.xlane.xlu1 %1592 }
 0x510   : > { %v1595_v36 = vsub.f32 %v1585_v22, %v1593_v35 }
 0x511   : > { %v1525_v37 = vmul.f32 1.442695, %v1522_v34 }
 0x512   : > { %v3720_v38 = vpop.eup %3719  ;;  %v1598_v40 = vmul.f32 1.442695, %v1595_v36  ;;  %v3482_v36 = vld [vmem:[%s4730_s14 + $0x38] sm:$0xff] }
 0x513   : > { %3721 = vpow2.f32 %v1525_v37  ;;  %v1600_v42 = vsel %vm1438_vm8, %v3720_v38, 0.0  ;;  %1811 = vmatpush.bf16.msrb.mxu1 %v3482_v36 }
 0x514   : > { %3723 = vpow2.f32 %v1598_v40  ;;  %1601 = vadd.xlane.f32.xlu2 %v1600_v42  ;;  %v3480_v40 = vld [vmem:[%s4730_s14 + $0x28] sm:$0xff] }
 0x515   : > { %3725 = vpow2.f32 %v1523_v43 }
 0x516   : > { %v1663_v44 = vpop.xlane.xlu0 %1662 }
 0x517   : > { %v1667_v45 = vsub.f32 %v1656_v25, %v1663_v44  ;;  %v3479_v44 = vld [vmem:[%s4730_s14 + $0x20] sm:$0xff] }
 0x519   : > { %v3722_v46 = vpop.eup %3721  ;;  %v1669_v47 = vmul.f32 1.442695, %v1667_v45 }
 0x51a   : > { %v3724_v48 = vpop.eup %3723  ;;  %v1530_v49 = vsel %vm1438_vm8, %v3722_v46, 0.0 }
 0x51b   : > { %3727 = vpow2.f32 %v1669_v47  ;;  %1531 = vadd.xlane.f32.xlu0 %v1530_v49  ;;  %v1603_v50 = vsel %vm1438_vm8, %v3724_v48, 0.0  ;;  %v3726_v53 = vpop.eup %3725 }
 0x51c   : > { %1604 = vadd.xlane.f32.xlu1 %v1603_v50  ;;  %v1527_v57 = vsel %vm1438_vm8, %v3726_v53, 0.0  ;;  %v3478_v50 = vld [vmem:[%s4730_s14 + $0x18] sm:$0xff] }
 0x51e   : > { %v1666_v51 = vpop.xlane.xlu2 %1665 }
 0x51f   : > { %v1668_v52 = vsub.f32 %v1658_v27, %v1666_v51  ;;  %v3477_v51 = vld [vmem:[%s4730_s14 + $0x10] sm:$0xff] }
 0x521   : > { %v3728_v54 = vpop.eup %3727  ;;  %v1671_v55 = vmul.f32 1.442695, %v1668_v52  ;;  %v3476_v52 = vld [vmem:[%s4730_s14 + $0x8] sm:$0xff] }
 0x522   : > { %v1673_v56 = vsel %vm1438_vm8, %v3728_v54, 0.0 }
 0x523   : > { %3729 = vpow2.f32 %v1671_v55  ;;  %1674 = vadd.xlane.f32.xlu2 %v1673_v56 }
 0x524   : > { %1528 = vadd.xlane.f32.xlu1 %v1527_v57 }
 0x529   : > { %v3730_v58 = vpop.eup %3729 }
 0x52a   : > { %v1676_v59 = vsel %vm1438_vm8, %v3730_v58, 0.0 }
 0x52c   : > { %1677 = vadd.xlane.f32.xlu1 %v1676_v59 }
 0x52f   : > { %1544 = vrot.lane.b32.xlu0 %v4853_v41, %s4298_s13 }
 0x53b   : > { %1617 = vrot.lane.b32.xlu2 %v4853_v41, %s4300_s9 }
 0x545   : > { %1690 = vrot.lane.b32.xlu1 %v4853_v41, %s4299_s30 }
 0x587   : > { %v1602_v60 = vpop.xlane.xlu2 %1601 }
 0x588   : > { %3731 = vrcp.f32 %v1602_v60 }
 0x58e   : > { %v1532_v61 = vpop.xlane.xlu0 %1531  ;;  %v3732_v63 = vpop.eup %3731 }
 0x58f   : > { %v1605_v62 = vpop.xlane.xlu1 %1604  ;;  %v1608_v1 = vmul.f32 %v3732_v63, %v3720_v38  ;;  %v3481_v38 = vld [vmem:[%s4730_s14 + $0x30] sm:$0xff] }
 0x590   : > { %3733 = vrcp.f32 %v1605_v62  ;;  %1812 = vmatpush.bf16.msrb.mxu1 %v3481_v38  ;;  %v3281_v38 = vld [vmem:[%s4746_s25 + $0xc8] sm:$0xf] }
 0x591   : > { %3735 = vrcp.f32 %v1532_v61  ;;  %v1610_v9 = vpack.c.bf16 %v1608_v1, %v1608_v1 }
 0x593   : > { %v1614_v41 = vunpack.c.l.b16 %v1610_v9 }
 0x594   : > { %1813 = vmatpush.bf16.msrb.mxu1 %v3480_v40 }
 0x596   : > { %v3734_v0 = vpop.eup %3733  ;;  %v1675_v4 = vpop.xlane.xlu2 %1674 }
 0x597   : > { %v1609_v5 = vmul.f32 %v3734_v0, %v3724_v48  ;;  %v1529_v6 = vpop.xlane.xlu1 %1528  ;;  %v3736_v7 = vpop.eup %3735 }
 0x598   : > { %3737 = vrcp.f32 %v1529_v6  ;;  %v1536_v11 = vmul.f32 %v3736_v7, %v3722_v46  ;;  %1814 = vmatpush.bf16.msrb.mxu1 %v3479_v44  ;;  %v3283_v44 = vld [vmem:[%s4746_s25 + $0xd8] sm:$0xf0] }
 0x599   : > { %v1611_v8 = vpack.c.bf16 %v1609_v5, %v1609_v5 }
 0x59a   : > { %v1538_v17 = vpack.c.bf16 %v1536_v11, %v1536_v11 }
 0x59b   : > { %v1615_v12 = vunpack.c.l.b16 %v1611_v8 }
 0x59c   : > { %v1542_v23 = vunpack.c.l.b16 %v1538_v17  ;;  %1815 = vmatpush.bf16.msrb.mxu1 %v3478_v50  ;;  %v3259_v50 = vld [vmem:[%s4746_s25 + $0xb0] sm:$0xf0] }
 0x59d   : > { %v1616_v19 = vpack.c.b16 %v1615_v12, %v1614_v41 }
 0x59e   : > { %v3738_v13 = vpop.eup %3737  ;;  %v1618_v14 = vpop.permute.xlu2 %1617 }
 0x59f   : > { %v1535_v18 = vmul.f32 %v3738_v13, %v3726_v53  ;;  %1630 = vmatpush.bf16.msra.mxu2 %v1618_v14  ;;  %v1678_v21 = vpop.xlane.xlu1 %1677  ;;  %v3475_v53 = vld [vmem:[%s4730_s14] sm:$0xff]  ;;  %s5408_s14 = scalar_lea.vmem [#allocation16], %s4702_s6 }
 0x5a0   : > { %3739 = vrcp.f32 %v1678_v21  ;;  %1816 = vmatpush.bf16.msrb.mxu1 %v3477_v51  ;;  %v3701_v8 = vld [vmem:[%s5408_s14] ss:$0 sm:$0xff]  ;;  %v3289_v21 = vld [vmem:[%s4746_s25 + $0xe0] sm:$0xf]  ;;  %v3265_v51 = vld [vmem:[%s4746_s25 + $0xa8] sm:$0xf] }
 0x5a1   : > { %v1537_v20 = vpack.c.bf16 %v1535_v18, %v1535_v18  ;;  %v1545_v22 = vpop.permute.xlu0 %1544  ;;  %3741 = vrcp.f32 %v1675_v4 }
 0x5a2   : > { %1557 = vmatpush.bf16.msrb.mxu0 %v1545_v22  ;;  %3140 = vmatmul.msk.bf16.vlgmr.msra.gmra.mxu2 %vm1438_vm8, %v1616_v19  ;;  %v3513_v22 = vld [vmem:[%s4746_s25 + $0xec] sm:$0xf0] }
 0x5a3   : > { %v1541_v24 = vunpack.c.l.b16 %v1537_v20 }
 0x5a4   : > { %1817 = vmatpush.bf16.msrb.mxu1 %v3476_v52  ;;  %v3506_v52 = vld [vmem:[%s4746_s25 + $0xb4] sm:$0xf0] }
 0x5a5   : > { %v1543_v25 = vpack.c.b16 %v1542_v23, %v1541_v24  ;;  %v3511_v23 = vld [vmem:[%s4746_s25 + $0xe4] sm:$0xf]  ;;  %v3290_v24 = vor.u32 %v3513_v22, %v3289_v21  ;;  %v3209_v22 = vld [vmem:[%s4746_s25 + $0x40] sm:$0xf] }
 0x5a6   : > { %v3740_v26 = vpop.eup %3739 }
 0x5a7   : > { %3138 = vmatmul.msk.bf16.vlgmr.msrb.gmra.mxu0 %vm1438_vm8, %v1543_v25  ;;  %v3742_v27 = vpop.eup %3741  ;;  %v1682_v28 = vmul.f32 %v3740_v26, %v3730_v58  ;;  %v3291_v25 = vld [vmem:[%s4746_s25 + $0xf0] sm:$0xf0]  ;;  %v3297_v26 = vld [vmem:[%s4746_s25 + $0xe8] sm:$0xf]  ;;  %2082 = vmatpush.bf16.msrb.mxu2 %v3290_v24  ;;  %v3491_v24 = vld [vmem:[%s4746_s25 + $0x44] sm:$0xf] }
 0x5a8   : > { %v1681_v29 = vmul.f32 %v3742_v27, %v3728_v54  ;;  %1818 = vmatpush.bf16.msrb.mxu1 %v3475_v53  ;;  %v3514_v27 = vld [vmem:[%s4746_s25 + $0xf4] sm:$0xf0] }
 0x5a9   : > { %v1684_v30 = vpack.c.bf16 %v1682_v28, %v1682_v28  ;;  %v3294_v28 = vor.u32 %v3511_v23, %v3291_v25  ;;  %v3493_v23 = vld [vmem:[%s4746_s25 + $0x4c] sm:$0xf0] }
 0x5aa   : > { %v1683_v31 = vpack.c.bf16 %v1681_v29, %v1681_v29  ;;  %v3298_v29 = vor.u32 %v3514_v27, %v3297_v26  ;;  %v3210_v25 = vor.u32 %v3493_v23, %v3209_v22  ;;  %v3211_v26 = vld [vmem:[%s4746_s25 + $0x50] sm:$0xf0]  ;;  %v3217_v27 = vld [vmem:[%s4746_s25 + $0x48] sm:$0xf] }
 0x5ab   : > { %v1688_v32 = vunpack.c.l.b16 %v1684_v30  ;;  %v3512_v30 = vld [vmem:[%s4746_s25 + $0xec] sm:$0xf]  ;;  %2096 = vmatpush.bf16.msra.mxu3 %v3294_v28  ;;  %v3494_v28 = vld [vmem:[%s4746_s25 + $0x54] sm:$0xf0]  ;;  %v3703_v22 = vld [vmem:[%s5410_s16] ss:$0 sm:$0xff] }
 0x5ac   : > { %v1687_v33 = vunpack.c.l.b16 %v1683_v31  ;;  %v3299_v31 = vld [vmem:[%s4746_s25 + $0xf8] sm:$0xf0] }
 0x5ae   : > { %v1689_v35 = vpack.c.b16 %v1688_v32, %v1687_v33  ;;  %v3302_v32 = vor.u32 %v3512_v30, %v3299_v31  ;;  %v3273_v33 = vld [vmem:[%s4746_s25 + $0xc0] sm:$0xf]  ;;  %v3218_v30 = vor.u32 %v3494_v28, %v3217_v27  ;;  %v3492_v31 = vld [vmem:[%s4746_s25 + $0x4c] sm:$0xf]  ;;  %v3538_v27 = vld [vmem:[%s4774_s19 + $0xb8] sm:$0xff] }
 0x5af   : > { %v3546_v28 = vld [vmem:[%s4774_s19 + $0xf8] sm:$0xff] }
 0x5b0   : > { %2124 = vmatpush.bf16.msra.mxu1 %v3302_v32  ;;  %v3219_v32 = vld [vmem:[%s4746_s25 + $0x58] sm:$0xf0] }
 0x5b7   : > { %v1691_v34 = vpop.permute.xlu1 %1690 }
 0x5b8   : > { %1703 = vmatpush.bf16.msra.mxu0 %v1691_v34  ;;  %v3509_v34 = vld [vmem:[%s4746_s25 + $0xcc] sm:$0xf0] }
 0x5b9   : > { %v3274_v36 = vor.u32 %v3509_v34, %v3273_v33  ;;  %v3222_v33 = vor.u32 %v3492_v31, %v3219_v32  ;;  %v3193_v34 = vld [vmem:[%s4746_s25 + $0x20] sm:$0xf]  ;;  %v3545_v31 = vld [vmem:[%s4774_s19 + $0xf0] sm:$0xff] }
 0x5bb   : > { %3142 = vmatmul.msk.bf16.vlgmr.msra.gmra.mxu0 %vm1438_vm8, %v1689_v35  ;;  %v3507_v35 = vld [vmem:[%s4746_s25 + $0xc4] sm:$0xf]  ;;  %2083 = vmatpush.bf16.msrb.mxu2 %v3274_v36 }
 0x5bc   : > { %2110 = vmatpush.bf16.msrb.mxu0 %v3298_v29  ;;  %v3214_v29 = vor.u32 %v3491_v24, %v3211_v26  ;;  %v3487_v36 = vld [vmem:[%s4746_s25 + $0x24] sm:$0xf]  ;;  %v5008_v26 = vld [vmem:[%s4772_s15] sm:$0xf]  ;;  %s5425_s15 = sld [smem:[#allocation37_spill]] }
 0x5c2   : > { %s3547_s23 = sshll.u32 %s5425_s15, 4 }
 0x624   : > { %v1559_v37 = vpop.f32.mrf.mxu0 }
 0x625   : > { %v1632_v39 = vpop.f32.mrf.mxu2 }
 0x62c   : > { %v1561_v42 = vpop.f32.mrf.mxu0 }
 0x62d   : > { %v3681_v43 = vpack.i.bf16 %v1561_v42, %v1559_v37  ;;  %v1634_v45 = vpop.f32.mrf.mxu2  ;;  %v3275_v37 = vld [vmem:[%s4746_s25 + $0xd0] sm:$0xf0] }
 0x62e   : > { %v3686_v46 = vpack.i.bf16 %v1634_v45, %v1632_v39  ;;  %v3510_v39 = vld [vmem:[%s4746_s25 + $0xd4] sm:$0xf0]  ;;  %v3278_v40 = vor.u32 %v3507_v35, %v3275_v37  ;;  %v3489_v35 = vld [vmem:[%s4746_s25 + $0x2c] sm:$0xf0] }
 0x62f   : > { %3682 = vrot.lane.b32.xlu0 %v3681_v43, %s4299_s30  ;;  %v3282_v42 = vor.u32 %v3510_v39, %v3281_v38  ;;  %v3508_v43 = vld [vmem:[%s4746_s25 + $0xcc] sm:$0xf]  ;;  %v3194_v37 = vor.u32 %v3489_v35, %v3193_v34  ;;  %v3195_v38 = vld [vmem:[%s4746_s25 + $0x30] sm:$0xf0]  ;;  %v3201_v39 = vld [vmem:[%s4746_s25 + $0x28] sm:$0xf] }
 0x630   : > { %v3286_v45 = vor.u32 %v3508_v43, %v3283_v44  ;;  %2097 = vmatpush.bf16.msra.mxu3 %v3278_v40  ;;  %v3490_v40 = vld [vmem:[%s4746_s25 + $0x34] sm:$0xf0]  ;;  %v3198_v43 = vor.u32 %v3487_v36, %v3195_v38  ;;  %v1914_v38 = vperm.slane %v5008_v26, 0 }
 0x631   : > { %2111 = vmatpush.bf16.msrb.mxu0 %v3282_v42  ;;  %v3202_v44 = vor.u32 %v3490_v40, %v3201_v39  ;;  %v3522_v36 = vld [vmem:[%s4774_s19 + $0x38] sm:$0xff]  ;;  %v1915_v39 = vperm.slane %v5008_v26, 1 }
 0x632   : > { %2125 = vmatpush.bf16.msra.mxu1 %v3286_v45  ;;  %v3488_v45 = vld [vmem:[%s4746_s25 + $0x2c] sm:$0xf] }
 0x637   : > { %3687 = vrot.lane.b32.xlu0 %v3686_v46, %s4300_s9  ;;  %v3257_v46 = vld [vmem:[%s4746_s25 + $0xa0] sm:$0xf] }
 0x638   : > { %v1705_v47 = vpop.f32.mrf.mxu0 }
 0x640   : > { %v1707_v48 = vpop.f32.mrf.mxu0 }
 0x641   : > { %v3691_v49 = vpack.i.bf16 %v1707_v48, %v1705_v47  ;;  %v3505_v47 = vld [vmem:[%s4746_s25 + $0xac] sm:$0xf0]  ;;  %v3503_v48 = vld [vmem:[%s4746_s25 + $0xa4] sm:$0xf] }
 0x642   : > { %v3262_v53 = vor.u32 %v3503_v48, %v3259_v50  ;;  %v3485_v50 = vld [vmem:[%s4746_s25 + $0xc] sm:$0xf0] }
 0x643   : > { %3692 = vrot.lane.b32.xlu2 %v3691_v49, %s4298_s13  ;;  %v3258_v49 = vor.u32 %v3505_v47, %v3257_v46  ;;  %v3203_v46 = vld [vmem:[%s4746_s25 + $0x38] sm:$0xf0]  ;;  %v3177_v47 = vld [vmem:[%s4746_s25] sm:$0xf] }
 0x644   : > { %2098 = vmatpush.bf16.msra.mxu3 %v3262_v53  ;;  %v3178_v53 = vor.u32 %v3485_v50, %v3177_v47  ;;  %v3529_v50 = vld [vmem:[%s4774_s19 + $0x70] sm:$0xff] }
 0x645   : > { %2084 = vmatpush.bf16.msrb.mxu2 %v3258_v49  ;;  %v3206_v49 = vor.u32 %v3488_v45, %v3203_v46 }
 0x69d   : > { %v3693_v57 = vpop.permute.xlu2 %3692 }
 0x69e   : > { %v3695_v61 = vunpack.i.h.bf16 %v3693_v57  ;;  %v3694_v62 = vunpack.i.l.bf16 %v3693_v57 }
 0x6a1   : > { %v3683_v54 = vpop.permute.xlu0 %3682 }
 0x6a2   : > { %v3685_v55 = vunpack.i.h.bf16 %v3683_v54  ;;  %v3684_v56 = vunpack.i.l.bf16 %v3683_v54  ;;  %v3266_v54 = vor.u32 %v3506_v52, %v3265_v51  ;;  %v3483_v51 = vld [vmem:[%s4746_s25 + $0x4] sm:$0xf]  ;;  %v3179_v52 = vld [vmem:[%s4746_s25 + $0x10] sm:$0xf0] }
 0x6a4   : > { %v1735_v63 = vsel %vm1417_vm7, %v4875_v16, %v3685_v55  ;;  %v1734_v0 = vsel %vm1417_vm7, %v4873_v15, %v3684_v56  ;;  %v3504_v55 = vld [vmem:[%s4746_s25 + $0xac] sm:$0xf]  ;;  %v3267_v56 = vld [vmem:[%s4746_s25 + $0xb8] sm:$0xf0]  ;;  %2112 = vmatpush.bf16.msrb.mxu0 %v3266_v54  ;;  %v3182_v54 = vor.u32 %v3483_v51, %v3179_v52 }
 0x6a5   : > { %v3270_v57 = vor.u32 %v3504_v55, %v3267_v56  ;;  %v3185_v55 = vld [vmem:[%s4746_s25 + $0x8] sm:$0xf]  ;;  %v3486_v56 = vld [vmem:[%s4746_s25 + $0x14] sm:$0xf0] }
 0x6a7   : > { %2126 = vmatpush.bf16.msra.mxu1 %v3270_v57  ;;  %v3484_v57 = vld [vmem:[%s4746_s25 + $0xc] sm:$0xf] }
 0x6a9   : > { %v3688_v58 = vpop.permute.xlu0 %3687 }
 0x6aa   : > { %v3690_v59 = vunpack.i.h.bf16 %v3688_v58  ;;  %v3689_v60 = vunpack.i.l.bf16 %v3688_v58  ;;  %v3241_v58 = vld [vmem:[%s4746_s25 + $0x80] sm:$0xf] }
 0x6ac   : > { %v1738_v1 = vsel %vm1736_vm9, %v1735_v63, %v3690_v59  ;;  %v1737_v4 = vsel %vm1736_vm9, %v1734_v0, %v3689_v60  ;;  %v3501_v59 = vld [vmem:[%s4746_s25 + $0x8c] sm:$0xf0]  ;;  %v3499_v60 = vld [vmem:[%s4746_s25 + $0x84] sm:$0xf]  ;;  %v3249_v63 = vld [vmem:[%s4746_s25 + $0x88] sm:$0xf] }
 0x6ad   : > { %v1740_v5 = vsel %vm1739_vm10, %v1737_v4, %v3694_v62  ;;  %v1741_v6 = vsel %vm1739_vm10, %v1738_v1, %v3695_v61  ;;  %v3242_v61 = vor.u32 %v3501_v59, %v3241_v58  ;;  %v3243_v62 = vld [vmem:[%s4746_s25 + $0x90] sm:$0xf0]  ;;  %v3502_v0 = vld [vmem:[%s4746_s25 + $0x94] sm:$0xf0]  ;;  %v3186_v59 = vor.u32 %v3486_v56, %v3185_v55 }
 0x6ae   : > { %v1742_v7 = vpack.c.bf16 %v1741_v6, %v1740_v5  ;;  %v3246_v1 = vor.u32 %v3499_v60, %v3243_v62  ;;  %v3250_v4 = vor.u32 %v3502_v0, %v3249_v63  ;;  %v3500_v5 = vld [vmem:[%s4746_s25 + $0x8c] sm:$0xf]  ;;  %v3251_v6 = vld [vmem:[%s4746_s25 + $0x98] sm:$0xf0] }
 0x6af   : > { %2085 = vmatpush.bf16.msrb.mxu2 %v3242_v61  ;;  %v3187_v60 = vld [vmem:[%s4746_s25 + $0x18] sm:$0xf0] }
 0x6b0   : > { %1819 = vmatmul.bf16.vlgmr.msrb.gmra.mxu1 %v1742_v7  ;;  %v3254_v7 = vor.u32 %v3500_v5, %v3251_v6  ;;  %2099 = vmatpush.bf16.msra.mxu3 %v3246_v1  ;;  %v3190_v61 = vor.u32 %v3484_v57, %v3187_v60 }
 0x6b1   : > { %2113 = vmatpush.bf16.msrb.mxu0 %v3250_v4 }
 0x6b2   : > { %2127 = vmatpush.bf16.msra.mxu1 %v3254_v7 }
 0x72d   : > { %v1820_v9 = vpop.f32.mrf.mxu1 }
 0x72e   : > { %v1821_v11 = vadd.f32 %v3701_v8, %v1820_v9  ;;  %v3497_v9 = vld [vmem:[%s4746_s25 + $0x6c] sm:$0xf0] }
 0x730   : > { %v4916_v12 = vadd.f32 %v1821_v11, %v4786_v2  ;;  %v3495_v11 = vld [vmem:[%s4746_s25 + $0x64] sm:$0xf] }
 0x732   : > { %1829 = vadd.xlane.f32.xlu0 %v4916_v12 }
 0x735   : > { %v1822_v16 = vpop.f32.mrf.mxu1 }
 0x736   : > { %v1823_v15 = vadd.f32 %v3701_v8, %v1822_v16  ;;  %v3225_v8 = vld [vmem:[%s4746_s25 + $0x60] sm:$0xf] }
 0x737   : > { %v3226_v16 = vor.u32 %v3497_v9, %v3225_v8 }
 0x738   : > { %v4920_v13 = vadd.f32 %v1823_v15, %v4790_v3  ;;  %v3227_v15 = vld [vmem:[%s4746_s25 + $0x70] sm:$0xf0] }
 0x739   : > { %2086 = vmatpush.bf16.msrb.mxu2 %v3226_v16 }
 0x73a   : > { %1831 = vadd.xlane.f32.xlu1 %v4920_v13 }
 0x73d   : > { %2087 = vmatpush.bf16.msrb.mxu2 %v3210_v25 }
 0x741   : > { %2088 = vmatpush.bf16.msrb.mxu2 %v3194_v37  ;;  %v3530_v37 = vld [vmem:[%s4774_s19 + $0x78] sm:$0xff] }
 0x745   : > { %2089 = vmatpush.bf16.msrb.mxu2 %v3178_v53  ;;  %v3535_v53 = vld [vmem:[%s4774_s19 + $0xa0] sm:$0xff] }
 0x749   : > { %2570 = vmatpush.bf16.msra.mxu2 %v3522_v36 }
 0x7a5   : > { %v1830_v41 = vpop.xlane.xlu0 %1829 }
 0x7a6   : > { %v1833_v14 = vmul.f32 %v1830_v41, %v4793_v10  ;;  %v3233_v41 = vld [vmem:[%s4746_s25 + $0x68] sm:$0xf] }
 0x7a8   : > { %v4925_v2 = vsub.f32 %v4916_v12, %v1833_v14  ;;  %v3498_v14 = vld [vmem:[%s4746_s25 + $0x74] sm:$0xf0] }
 0x7aa   : > { %v1837_v17 = vmul.f32 %v4925_v2, %v4925_v2 }
 0x7ac   : > { %1839 = vadd.xlane.f32.xlu2 %v1837_v17  ;;  %v3230_v17 = vor.u32 %v3495_v11, %v3227_v15 }
 0x7ad   : > { %v1832_v18 = vpop.xlane.xlu1 %1831 }
 0x7ae   : > { %v1834_v3 = vmul.f32 %v1832_v18, %v4793_v10  ;;  %v3234_v18 = vor.u32 %v3498_v14, %v3233_v41  ;;  %2100 = vmatpush.bf16.msra.mxu3 %v3230_v17  ;;  %v3702_v17 = vld [vmem:[%s5409_s0] ss:$0 sm:$0xff] }
 0x7b0   : > { %v4931_v19 = vsub.f32 %v4920_v13, %v1834_v3  ;;  %v3496_v3 = vld [vmem:[%s4746_s25 + $0x6c] sm:$0xf]  ;;  %2114 = vmatpush.bf16.msrb.mxu0 %v3234_v18 }
 0x7b2   : > { %v1838_v20 = vmul.f32 %v4931_v19, %v4931_v19  ;;  %2101 = vmatpush.bf16.msra.mxu3 %v3214_v29  ;;  %v1917_v29 = vperm.slane %v5008_v26, 3 }
 0x7b4   : > { %1841 = vadd.xlane.f32.xlu0 %v1838_v20  ;;  %v3235_v20 = vld [vmem:[%s4746_s25 + $0x78] sm:$0xf0]  ;;  %2115 = vmatpush.bf16.msrb.mxu0 %v3218_v30  ;;  %v3537_v30 = vld [vmem:[%s4774_s19 + $0xb0] sm:$0xff] }
 0x7b5   : > { %v3238_v21 = vor.u32 %v3496_v3, %v3235_v20 }
 0x7b6   : > { %2102 = vmatpush.bf16.msra.mxu3 %v3198_v43  ;;  %v3536_v43 = vld [vmem:[%s4774_s19 + $0xa8] sm:$0xff] }
 0x7b7   : > { %2128 = vmatpush.bf16.msra.mxu1 %v3238_v21 }
 0x7b8   : > { %2116 = vmatpush.bf16.msrb.mxu0 %v3202_v44  ;;  %v3544_v44 = vld [vmem:[%s4774_s19 + $0xe8] sm:$0xff] }
 0x7ba   : > { %2103 = vmatpush.bf16.msra.mxu3 %v3182_v54  ;;  %v3543_v54 = vld [vmem:[%s4774_s19 + $0xe0] sm:$0xff] }
 0x7bb   : > { %2129 = vmatpush.bf16.msra.mxu1 %v3222_v33 }
 0x7bc   : > { %2117 = vmatpush.bf16.msrb.mxu0 %v3186_v59 }
 0x7be   : > { %2584 = vmatpush.bf16.msrb.mxu3 %v3530_v37 }
 0x7bf   : > { %2130 = vmatpush.bf16.msra.mxu1 %v3206_v49  ;;  %v3521_v49 = vld [vmem:[%s4774_s19 + $0x30] sm:$0xff] }
 0x7c0   : > { %2598 = vmatpush.bf16.msra.mxu0 %v3538_v27  ;;  %2571 = vmatpush.bf16.msra.mxu2 %v3521_v49 }
 0x7c2   : > { %2585 = vmatpush.bf16.msrb.mxu3 %v3529_v50 }
 0x7c3   : > { %2131 = vmatpush.bf16.msra.mxu1 %v3190_v61  ;;  %v3520_v61 = vld [vmem:[%s4774_s19 + $0x28] sm:$0xff] }
 0x7c4   : > { %2599 = vmatpush.bf16.msra.mxu0 %v3537_v30  ;;  %2572 = vmatpush.bf16.msra.mxu2 %v3520_v61  ;;  %v3525_v30 = vld [vmem:[%s4774_s19 + $0x50] sm:$0xff] }
 0x7c7   : > { %2612 = vmatpush.bf16.msrb.mxu1 %v3546_v28  ;;  %v3540_v28 = vld [vmem:[%s4774_s19 + $0xc8] sm:$0xff] }
 0x7c8   : > { %2600 = vmatpush.bf16.msra.mxu0 %v3536_v43 }
 0x7cb   : > { %2613 = vmatpush.bf16.msrb.mxu1 %v3545_v31 }
 0x7cc   : > { %2601 = vmatpush.bf16.msra.mxu0 %v3535_v53 }
 0x7cf   : > { %2614 = vmatpush.bf16.msrb.mxu1 %v3544_v44 }
 0x7d3   : > { %2615 = vmatpush.bf16.msrb.mxu1 %v3543_v54 }
 0x81f   : > { %v1840_v42 = vpop.xlane.xlu2 %1839 }
 0x820   : > { %v1843_v48 = vmul.f32 %v1840_v42, %v4793_v10 }
 0x822   : > { %v1845_v58 = vadd.f32 1e-05, %v1843_v48 }
 0x824   : > { %3743 = vrsqrt.f32 %v1845_v58  ;;  %vm1853_vm12 = vweird.f32 %v1845_v58 }
 0x827   : > { %v1842_v62 = vpop.xlane.xlu0 %1841 }
 0x828   : > { %v1844_v63 = vmul.f32 %v1842_v62, %v4793_v10  ;;  %v3528_v62 = vld [vmem:[%s4774_s19 + $0x68] sm:$0xff] }
 0x829   : > { %2586 = vmatpush.bf16.msrb.mxu3 %v3528_v62 }
 0x82a   : > { %v3744_v0 = vpop.eup %3743  ;;  %v1846_v1 = vadd.f32 1e-05, %v1844_v63 }
 0x82b   : > { %v1848_v4 = vmul.f32 %v3744_v0, %v1845_v58  ;;  %vm1854_vm11 = vweird.f32 %v3744_v0 }
 0x82c   : > { %3745 = vrsqrt.f32 %v1846_v1  ;;  %vm1855_vm13 = vmor %vm1853_vm12, %vm1854_vm11  ;;  %vm1863_vm15 = vweird.f32 %v1846_v1 }
 0x82d   : > { %v1849_v5 = vmul.f32 %v3744_v0, %v1848_v4 }
 0x82f   : > { %v1850_v6 = vmul.f32 0.5, %v1849_v5  ;;  %v3534_v5 = vld [vmem:[%s4774_s19 + $0x98] sm:$0xff] }
 0x830   : > { %2602 = vmatpush.bf16.msra.mxu0 %v3534_v5 }
 0x831   : > { %v1851_v7 = vsub.f32 1.5, %v1850_v6  ;;  %v3542_v6 = vld [vmem:[%s4774_s19 + $0xd8] sm:$0xff] }
 0x832   : > { %v3746_v8 = vpop.eup %3745  ;;  %2616 = vmatpush.bf16.msrb.mxu1 %v3542_v6 }
 0x833   : > { %v1852_v9 = vmul.f32 %v3744_v0, %v1851_v7  ;;  %v1858_v11 = vmul.f32 %v3746_v8, %v1846_v1  ;;  %vm1864_vm14 = vweird.f32 %v3746_v8 }
 0x834   : > { %vm1865_vm0 = vmor %vm1863_vm15, %vm1864_vm14 }
 0x835   : > { %v1859_v16 = vmul.f32 %v3746_v8, %v1858_v11  ;;  %v1856_v15 = vsel %vm1855_vm13, %v3744_v0, %v1852_v9  ;;  %v3519_v11 = vld [vmem:[%s4774_s19 + $0x20] sm:$0xff] }
 0x836   : > { %v1867_v10 = vmul.f32 %v1856_v15, %v4925_v2  ;;  %2573 = vmatpush.bf16.msra.mxu2 %v3519_v11 }
 0x837   : > { %v1860_v41 = vmul.f32 0.5, %v1859_v16  ;;  %v3527_v16 = vld [vmem:[%s4774_s19 + $0x60] sm:$0xff] }
 0x838   : > { %v1872_v21 = vmul.f32 %v3702_v17, %v1867_v10  ;;  %2587 = vmatpush.bf16.msrb.mxu3 %v3527_v16 }
 0x839   : > { %v1861_v14 = vsub.f32 1.5, %v1860_v41 }
 0x83a   : > { %v1877_v24 = vadd.f32 %v3703_v22, %v1872_v21  ;;  %v3526_v21 = vld [vmem:[%s4774_s19 + $0x58] sm:$0xff] }
 0x83b   : > { %v1862_v18 = vmul.f32 %v3746_v8, %v1861_v14 }
 0x83c   : > { %2588 = vmatpush.bf16.msrb.mxu3 %v3526_v21 }
 0x83d   : > { %v1866_v3 = vsel %vm1865_vm0, %v3746_v8, %v1862_v18  ;;  %v3533_v18 = vld [vmem:[%s4774_s19 + $0x90] sm:$0xff] }
 0x83e   : > { %v1868_v20 = vmul.f32 %v1866_v3, %v4931_v19  ;;  %v1916_v19 = vperm.slane %v5008_v26, 2  ;;  %v3541_v3 = vld [vmem:[%s4774_s19 + $0xd0] sm:$0xff]  ;;  %2603 = vmatpush.bf16.msra.mxu0 %v3533_v18  ;;  %v3524_v26 = vld [vmem:[%s4774_s19 + $0x48] sm:$0xff] }
 0x83f   : > { %2617 = vmatpush.bf16.msrb.mxu1 %v3541_v3 }
 0x840   : > { %v1873_v23 = vmul.f32 %v3702_v17, %v1868_v20  ;;  %v3518_v20 = vld [vmem:[%s4774_s19 + $0x18] sm:$0xff]  ;;  %2589 = vmatpush.bf16.msrb.mxu3 %v3525_v30 }
 0x841   : > { %2574 = vmatpush.bf16.msra.mxu2 %v3518_v20 }
 0x842   : > { %v1878_v25 = vadd.f32 %v3703_v22, %v1873_v23 }
 0x843   : > { %2618 = vmatpush.bf16.msrb.mxu1 %v3540_v28 }
 0x844   : > { %v1879_v2 = vpack.c.bf16 %v1878_v25, %v1877_v24  ;;  %v3532_v25 = vld [vmem:[%s4774_s19 + $0x88] sm:$0xff]  ;;  %2590 = vmatpush.bf16.msrb.mxu3 %v3524_v26 }
 0x845   : > { %2604 = vmatpush.bf16.msra.mxu0 %v3532_v25 }
 0x846   : > { %2090 = vmatmul.bf16.vlgmr.msrb.gmra.mxu2 %v1879_v2  ;;  %2104 = vmatmul.bf16.vlgmr.msra.gmra.mxu3 %v1879_v2 }
 0x847   : > { %2118 = vmatmul.bf16.vlgmr.msrb.gmra.mxu0 %v1879_v2  ;;  %2132 = vmatmul.bf16.vlgmr.msra.gmra.mxu1 %v1879_v2 }
 0x8c4   : > { %v2119_v32 = vpop.f32.mrf.mxu0  ;;  %v2133_v33 = vpop.f32.mrf.mxu1 }
 0x8c5   : > { %v5016_v34 = vadd.f32 %v2119_v32, %v1916_v19  ;;  %v5018_v35 = vadd.f32 %v2133_v33, %v1917_v29 }
 0x8c7   : > { %v3305_v40 = vmul.f32 -1.702, %v5016_v34  ;;  %v3306_v42 = vmul.f32 -1.702, %v5018_v35 }
 0x8c9   : > { %v2158_v45 = vmul.f32 1.442695, %v3305_v40  ;;  %v2160_v46 = vmul.f32 1.442695, %v3306_v42  ;;  %v2091_v47 = vpop.f32.mrf.mxu2  ;;  %v2105_v48 = vpop.f32.mrf.mxu3  ;;  %v3539_v40 = vld [vmem:[%s4774_s19 + $0xc0] sm:$0xff] }
 0x8ca   : > { %v5030_v51 = vadd.f32 %v2091_v47, %v1914_v38  ;;  %v5034_v52 = vadd.f32 %v2105_v48, %v1915_v39  ;;  %v3516_v47 = vld [vmem:[%s4774_s19 + $0x8] sm:$0xff]  ;;  %2619 = vmatpush.bf16.msrb.mxu1 %v3539_v40 }
 0x8cb   : > { %3747 = vpow2.f32 %v2158_v45 }
 0x8cc   : > { %3749 = vpow2.f32 %v2160_v46  ;;  %v3303_v55 = vmul.f32 -1.702, %v5030_v51  ;;  %v3304_v56 = vmul.f32 -1.702, %v5034_v52  ;;  %v2121_v57 = vpop.f32.mrf.mxu0  ;;  %v2135_v58 = vpop.f32.mrf.mxu1 }
 0x8cd   : > { %v5040_v59 = vadd.f32 %v2121_v57, %v1916_v19  ;;  %v5042_v60 = vadd.f32 %v2135_v58, %v1917_v29  ;;  %v3517_v29 = vld [vmem:[%s4774_s19 + $0x10] sm:$0xff] }
 0x8ce   : > { %v2154_v63 = vmul.f32 1.442695, %v3303_v55  ;;  %v2156_v0 = vmul.f32 1.442695, %v3304_v56  ;;  %2575 = vmatpush.bf16.msra.mxu2 %v3517_v29  ;;  %v3515_v55 = vld [vmem:[%s4774_s19] sm:$0xff] }
 0x8cf   : > { %v3309_v1 = vmul.f32 -1.702, %v5040_v59  ;;  %v3310_v4 = vmul.f32 -1.702, %v5042_v60  ;;  %v3523_v56 = vld [vmem:[%s4774_s19 + $0x40] sm:$0xff] }
 0x8d0   : > { %3751 = vpow2.f32 %v2154_v63  ;;  %2591 = vmatpush.bf16.msrb.mxu3 %v3523_v56 }
 0x8d1   : > { %v3748_v7 = vpop.eup %3747  ;;  %v2166_v8 = vmul.f32 1.442695, %v3309_v1  ;;  %v2093_v9 = vpop.f32.mrf.mxu2  ;;  %3753 = vpow2.f32 %v2156_v0  ;;  %v2168_v14 = vmul.f32 1.442695, %v3310_v4 }
 0x8d2   : > { %v3750_v15 = vpop.eup %3749  ;;  %v5052_v41 = vadd.f32 1.0, %v3748_v7  ;;  %v5054_v10 = vadd.f32 %v2093_v9, %v1914_v38  ;;  %v2107_v27 = vpop.f32.mrf.mxu3  ;;  %v3531_v38 = vld [vmem:[%s4774_s19 + $0x80] sm:$0xff]  ;;  %2576 = vmatpush.bf16.msra.mxu2 %v3516_v47 }
 0x8d3   : > { %v5056_v17 = vadd.f32 1.0, %v3750_v15  ;;  %3755 = vpow2.f32 %v2166_v8  ;;  %v5080_v37 = vadd.f32 %v2107_v27, %v1915_v39  ;;  %2605 = vmatpush.bf16.msra.mxu0 %v3531_v38 }
 0x8d4   : > { %3757 = vrcp.f32 %v5052_v41  ;;  %v3307_v23 = vmul.f32 -1.702, %v5054_v10  ;;  %v2217_v54 = vand.u32 2147483647, %v5052_v41  ;;  %v2219_v57 = vand.u32 2147483648, %v5052_v41 }
 0x8d5   : > { %3759 = vrcp.f32 %v5056_v17  ;;  %v3308_v48 = vmul.f32 -1.702, %v5080_v37  ;;  %v2232_v58 = vand.u32 2147483647, %v5056_v17  ;;  %v2234_v61 = vand.u32 2147483648, %v5056_v17 }
 0x8d6   : > { %v3752_v22 = vpop.eup %3751  ;;  %3761 = vpow2.f32 %v2168_v14  ;;  %v2162_v32 = vmul.f32 1.442695, %v3307_v23  ;;  %2577 = vmatpush.bf16.msra.mxu2 %v3515_v55  ;;  %vm2213_vm2 = vweird.f32 %v5052_v41  ;;  %vm5113_vm3 = vcmp.eq.f32.partialorder %v2217_v54, 8.507059e+37 }
 0x8d7   : > { %v5065_v24 = vadd.f32 1.0, %v3752_v22  ;;  %v3754_v2 = vpop.eup %3753  ;;  %v2164_v62 = vmul.f32 1.442695, %v3308_v48  ;;  %vm2228_vm4 = vweird.f32 %v5056_v17  ;;  %v2220_v7 = vor.u32 1.1754944e-38, %v2219_v57 }
 0x8d8   : > { %v5086_v45 = vadd.f32 1.0, %v3754_v2  ;;  %vm5118_vm5 = vcmp.eq.f32.partialorder %v2232_v58, 8.507059e+37  ;;  %v2235_v9 = vor.u32 1.1754944e-38, %v2234_v61 }
 0x8d9   : > { %v3756_v19 = vpop.eup %3755  ;;  %3763 = vrcp.f32 %v5065_v24  ;;  %v2189_v23 = vand.u32 2147483648, %v5065_v24  ;;  %v2187_v58 = vand.u32 2147483647, %v5065_v24 }
 0x8da   : > { %v5071_v31 = vpop.eup %3757  ;;  %v5088_v46 = vadd.f32 1.0, %v3756_v19  ;;  %3765 = vpow2.f32 %v2162_v32 }
 0x8db   : > { %v5073_v33 = vpop.eup %3759  ;;  %v2209_v36 = vmul.f32 %v5071_v31, %v5052_v41  ;;  %vm2214_vm1 = vweird.f32 %v5071_v31 }
 0x8dc   : > { %v3762_v42 = vpop.eup %3761  ;;  %v2224_v43 = vmul.f32 %v5073_v33, %v5056_v17  ;;  %3767 = vrcp.f32 %v5088_v46  ;;  %vm5125_vm6 = vmor %vm2213_vm2, %vm2214_vm1  ;;  %vm2229_vm7 = vweird.f32 %v5073_v33  ;;  %v2277_v41 = vand.u32 2147483647, %v5088_v46 }
 0x8dd   : > { %v2210_v44 = vsub.f32 1.0, %v2209_v36  ;;  %v5092_v39 = vadd.f32 1.0, %v3762_v42  ;;  %3769 = vrcp.f32 %v5086_v45  ;;  %vm2273_vm8 = vweird.f32 %v5088_v46  ;;  %vm5150_vm10 = vmor %vm2228_vm4, %vm2229_vm7 }
 0x8de   : > { %v2225_v50 = vsub.f32 1.0, %v2224_v43  ;;  %v2279_v25 = vand.u32 2147483648, %v5088_v46  ;;  %vm5155_vm12 = vcmp.eq.f32.partialorder %v2277_v41, 8.507059e+37  ;;  %vm2183_vm1 = vweird.f32 %v5065_v24 }
 0x8df   : > { %v2211_v49 = vmul.f32 %v5071_v31, %v2210_v44  ;;  %v5097_v53 = vpop.eup %3763  ;;  %3771 = vrcp.f32 %v5092_v39  ;;  %v2294_v17 = vand.u32 2147483648, %v5092_v39  ;;  %v2292_v44 = vand.u32 2147483647, %v5092_v39 }
 0x8e0   : > { %v3766_v63 = vpop.eup %3765  ;;  %v2226_v1 = vmul.f32 %v5073_v33, %v2225_v50  ;;  %v2179_v4 = vmul.f32 %v5097_v53, %v5065_v24  ;;  %3773 = vpow2.f32 %v2164_v62  ;;  %vm2184_vm11 = vweird.f32 %v5097_v53 }
 0x8e1   : > { %v2212_v0 = vadd.f32 %v5071_v31, %v2211_v49  ;;  %v5131_v14 = vadd.f32 1.0, %v3766_v63  ;;  %v2280_v42 = vor.u32 1.1754944e-38, %v2279_v25  ;;  %vm2288_vm15 = vweird.f32 %v5092_v39 }
 0x8e2   : > { %v3768_v5 = vpop.eup %3767  ;;  %v2227_v20 = vadd.f32 %v5073_v33, %v2226_v1  ;;  %v2180_v21 = vsub.f32 1.0, %v2179_v4  ;;  %v2295_v57 = vor.u32 1.1754944e-38, %v2294_v17  ;;  %vm2293_vm2 = vcmp.eq.f32.partialorder %v2292_v44, 8.507059e+37  ;;  %v3704_v17 = vld [vmem:[%s1083_s12] ss:$0 sm:$0xff]  ;;  %s5427_s12 = sld [smem:[#allocation66_spill]] }
 0x8e3   : > { %v2269_v11 = vmul.f32 %v3768_v5, %v5088_v46  ;;  %v5123_v16 = vpop.eup %3769  ;;  %v2216_v3 = vsel %vm5125_vm6, %v5071_v31, %v2212_v0  ;;  %vm2274_vm9 = vweird.f32 %v3768_v5  ;;  %3775 = vrcp.f32 %v5131_v14 }
 0x8e4   : > { %v2194_v27 = vmul.f32 %v5123_v16, %v5086_v45  ;;  %v2221_v19 = vsel %vm5113_vm3, %v2220_v7, %v2216_v3  ;;  %v2231_v32 = vsel %vm5150_vm10, %v5073_v33, %v2227_v20  ;;  %v2181_v36 = vmul.f32 %v5097_v53, %v2180_v21  ;;  %vm2275_vm13 = vmor %vm2273_vm8, %vm2274_vm9 }
 0x8e5   : > { %v3772_v18 = vpop.eup %3771  ;;  %v2270_v22 = vsub.f32 1.0, %v2269_v11  ;;  %v2300_v33 = vmul.f32 %v2221_v19, %v5016_v34  ;;  %v2236_v49 = vsel %vm5118_vm5, %v2235_v9, %v2231_v32  ;;  %vm5185_vm3 = vmor %vm2183_vm1, %vm2184_vm11  ;;  %v2190_v24 = vor.u32 1.1754944e-38, %v2189_v23 }
 0x8e6   : > { %v2284_v2 = vmul.f32 %v3772_v18, %v5092_v39  ;;  %v3774_v40 = vpop.eup %3773  ;;  %vm2289_vm14 = vweird.f32 %v3772_v18  ;;  %v2195_v47 = vsub.f32 1.0, %v2194_v27  ;;  %v2182_v55 = vadd.f32 %v5097_v53, %v2181_v36 }
 0x8e7   : > { %v2271_v28 = vmul.f32 %v3768_v5, %v2270_v22  ;;  %v5168_v48 = vadd.f32 1.0, %v3774_v40  ;;  %vm2290_vm0 = vmor %vm2288_vm15, %vm2289_vm14  ;;  %v2301_v0 = vmul.f32 %v2236_v49, %v5018_v35  ;;  %v2249_v6 = vand.u32 2147483648, %v5131_v14 }
 0x8e8   : > { %v2285_v31 = vsub.f32 1.0, %v2284_v2  ;;  %v2196_v61 = vmul.f32 %v5123_v16, %v2195_v47  ;;  %v2247_v35 = vand.u32 2147483647, %v5131_v14  ;;  %vm2188_vm5 = vcmp.eq.f32.partialorder %v2187_v58, 8.507059e+37  ;;  %s2642_s7 = scalar_lea.hbm %s5427_s12, %s3547_s23  ;;  %s4163_s28 = scalar_lea.hbm %s5427_s12, 32 }
 0x8e9   : > { %v2272_v38 = vadd.f32 %v3768_v5, %v2271_v28  ;;  %v3776_v54 = vpop.eup %3775  ;;  %3777 = vrcp.f32 %v5168_v48  ;;  %vm2199_vm6 = vweird.f32 %v5123_v16  ;;  %vm2243_vm7 = vweird.f32 %v5131_v14  ;;  %s2645_s24 = sshll.u32 %s2642_s7, 4  ;;  %s2646_s24 = int_to_ptr.hbm [resolvable:$true] %s2645_s24 }
 0x8ea   : > { %v2286_v43 = vmul.f32 %v3772_v18, %v2285_v31  ;;  %v2239_v34 = vmul.f32 %v3776_v54, %v5131_v14  ;;  %vm2244_vm4 = vweird.f32 %v3776_v54  ;;  %v2197_v11 = vadd.f32 %v5123_v16, %v2196_v61  ;;  %s4157_s5 = sshra.s32 %s2646_s24, 4  ;;  %s4158_s5 = int_to_ptr.hbm [resolvable:$true] %s4157_s5 }
 0x8eb   : > { %v2276_v26 = vsel %vm2275_vm13, %v3768_v5, %v2272_v38  ;;  %v2186_v5 = vsel %vm5185_vm3, %v5097_v53, %v2182_v55  ;;  %vm2198_vm8 = vweird.f32 %v5086_v45  ;;  %v2204_v41 = vand.u32 2147483648, %v5086_v45  ;;  %vm2245_vm9 = vmor %vm2243_vm7, %vm2244_vm4  ;;  %s4159_s8 = scalar_lea.hbm %s4158_s5, 16  ;;  %p4164_p0 = scmp.lt.s32.totalorder %s4158_s5, %s5427_s12 }
 0x8ec   : > { %v2281_v46 = vsel %vm5155_vm12, %v2280_v42, %v2276_v26  ;;  %v2287_v50 = vadd.f32 %v3772_v18, %v2286_v43  ;;  %v2240_v4 = vsub.f32 1.0, %v2239_v34  ;;  %vm5201_vm10 = vmor %vm2198_vm8, %vm2199_vm6  ;;  %v2202_v20 = vand.u32 2147483647, %v5086_v45  ;;  %p4160_p11 = scmp.ne.s32.totalorder %s4158_s5, %s4159_s8  ;;  %p4165_p5 = scmp.lt.s32.totalorder %s4163_s28, %s4159_s8 }
 0x8ed   : > { %v2304_v56 = vmul.f32 %v2281_v46, %v5040_v59  ;;  %vm2248_vm11 = vcmp.eq.f32.partialorder %v2247_v35, 8.507059e+37  ;;  %v2201_v23 = vsel %vm5201_vm10, %v5123_v16, %v2197_v11  ;;  %v2264_v2 = vand.u32 2147483648, %v5168_v48 }
 0x8ee   : > { %v2291_v39 = vsel %vm2290_vm0, %v3772_v18, %v2287_v50  ;;  %v2241_v8 = vmul.f32 %v3776_v54, %v2240_v4  ;;  %v2250_v18 = vor.u32 1.1754944e-38, %v2249_v6  ;;  %v2262_v19 = vand.u32 2147483647, %v5168_v48  ;;  %p4161_p12 = pnand %p4160_p11, %p4515_p4  ;;  %p4166_p8 = por %p4165_p5, %p4164_p0 }
 0x8ef   : > { %v2308_v62 = vpack.c.bf16 %v2304_v56, %v2300_v33  ;;  %v2296_v63 = vsel %vm2293_vm2, %v2295_v57, %v2291_v39  ;;  %v3778_v9 = vpop.eup %3777  ;;  %v2205_v29 = vor.u32 1.1754944e-38, %v2204_v41  ;;  %vm2203_vm13 = vcmp.eq.f32.partialorder %v2202_v20, 8.507059e+37 }
 0x8f0   : > { %v2305_v1 = vmul.f32 %v2296_v63, %v5042_v60  ;;  %v2191_v60 = vsel %vm2188_vm5, %v2190_v24, %v2186_v5  ;;  %v2242_v15 = vadd.f32 %v3776_v54, %v2241_v8  ;;  %v2254_v53 = vmul.f32 %v3778_v9, %v5168_v48  ;;  %p4162_p13 = pneg %p4161_p12 }
 0x8f1   : > { %2606 = vmatmul.bf16.vlgmr.msra.gmra.mxu0 %v2308_v62  ;;  %v2298_v14 = vmul.f32 %v2191_v60, %v5030_v51  ;;  %vm2259_vm12 = vweird.f32 %v3778_v9  ;;  %vm2258_vm14 = vweird.f32 %v5168_v48  ;;  %v2206_v51 = vsel %vm2203_vm13, %v2205_v29, %v2201_v23 }
 0x8f2   : > { %v2309_v7 = vpack.c.bf16 %v2305_v1, %v2301_v0  ;;  %v2246_v21 = vsel %vm2245_vm9, %v3776_v54, %v2242_v15  ;;  %v2255_v22 = vsub.f32 1.0, %v2254_v53  ;;  %vm2260_vm15 = vmor %vm2258_vm14, %vm2259_vm12  ;;  %v2265_v31 = vor.u32 1.1754944e-38, %v2264_v2  ;;  %p4167_p2 = pnand %p4166_p8, %p4162_p13 }
 0x8f3   : > { %v2251_v25 = vsel %vm2248_vm11, %v2250_v18, %v2246_v21  ;;  %vm2263_vm0 = vcmp.eq.f32.partialorder %v2262_v19, 8.507059e+37 }
 0x8f4   : > { %2620 = vmatmul.bf16.vlgmr.msrb.gmra.mxu1 %v2309_v7  ;;  %v2302_v27 = vmul.f32 %v2251_v25, %v5054_v10  ;;  %v2256_v28 = vmul.f32 %v3778_v9, %v2255_v22  ;;  %v2299_v10 = vmul.f32 %v2206_v51, %v5034_v52 }
 0x8f6   : > { %v2306_v45 = vpack.c.bf16 %v2302_v27, %v2298_v14  ;;  %v2257_v30 = vadd.f32 %v3778_v9, %v2256_v28 }
 0x8f8   : > { %v2261_v16 = vsel %vm2260_vm15, %v3778_v9, %v2257_v30  ;;  %2578 = vmatmul.bf16.vlgmr.msra.gmra.mxu2 %v2306_v45 }
 0x8f9   : > { %v2266_v32 = vsel %vm2263_vm0, %v2265_v31, %v2261_v16 }
 0x8fa   : > { %v2303_v36 = vmul.f32 %v2266_v32, %v5080_v37 }
 0x8fc   : > { %v2307_v38 = vpack.c.bf16 %v2303_v36, %v2299_v10 }
 0x8fe   : > { %2592 = vmatmul.bf16.vlgmr.msrb.gmra.mxu3 %v2307_v38 }
 0x96e   : > { %v2607_v43 = vpop.f32.mrf.mxu0 }
 0x971   : > { %v2621_v26 = vpop.f32.mrf.mxu1 }
 0x976   : > { %v2609_v54 = vpop.f32.mrf.mxu0 }
 0x979   : > { %v2623_v56 = vpop.f32.mrf.mxu1 }
 0x97b   : > { %v2579_v40 = vpop.f32.mrf.mxu2 }
 0x97c   : > { %v2580_v42 = vadd.f32 %v3704_v17, %v2579_v40 }
 0x981   : > { %v2593_v44 = vpop.f32.mrf.mxu3 }
 0x982   : > { %v2594_v47 = vadd.f32 %v2593_v44, %v2580_v42 }
 0x983   : > { %v2581_v48 = vpop.f32.mrf.mxu2 }
 0x984   : > { %v2608_v33 = vadd.f32 %v2607_v43, %v2594_v47  ;;  %v2582_v49 = vadd.f32 %v3704_v17, %v2581_v48 }
 0x986   : > { %v2622_v52 = vadd.f32 %v2621_v26, %v2608_v33 }
 0x988   : > { %v2626_v37 = vadd.f32 %v2622_v52, %v4916_v12 }
 0x989   : > { %v2595_v46 = vpop.f32.mrf.mxu3 }
 0x98a   : > { %2628 = vst [vmem:[%s4778_s3] sm:$0xff] %v2626_v37  ;;  %v2596_v50 = vadd.f32 %v2595_v46, %v2582_v49 }
 0x98c   : > { %v2610_v55 = vadd.f32 %v2609_v54, %v2596_v50 }
 0x98e   : > { %v2624_v57 = vadd.f32 %v2623_v56, %v2610_v55 }
 0x990   : > { %v2627_v39 = vadd.f32 %v2624_v57, %v4920_v13 }
 0x992   : > { %2629 = vst [vmem:[%s4778_s3 + $0x8] sm:$0xff] %v2627_v39 }
 0x993   : > { %4170 = shalt.err (!%p4167_p2)
}
 0x994   : > { %s4301_s20 = smov 128   ;;  %s4302_s3 = smov 8  }
 0x995   : > { %3574 = dma.vmem_to_hbm [thread:$0]  (%p4515_p4), %s2644_s21, 256, %s2646_s24, %s2631_s2, %s4301_s20, %s4301_s20, %s4302_s3  }
 0x996 PF: > { %s5429_s26 = sld [smem:[#allocation39_spill]] }
 0x997   : > { %s5430_s13 = sld [smem:[#allocation34_spill]] }
 0x99c   : > { %p3580_p1 = scmp.ge.s32.totalorder %s5429_s26, 2 }
 0x99d   : > { %s2660_s9 = sand.u32 1, %s5430_s13  }
 0x99e   : > { %p3577_p3 = pnand %p3580_p1, %p4522_p10  ;;  %s2661_s14 = scalar_lea.sflag [#allocation4], %s2660_s9 }
 0x9a0   : > { %p3578_p6 = pneg %p3577_p3 }
 0x9a2   : > { %4244 = dma.done.wait (%p3578_p6), %s2661_s14, 256  }
 0x9a3   : > { %4246 = vsyncadd (%p3578_p6), %s2661_s14, 4294967040  ;;  %s51_s1 = sadd.s32 1, %s5429_s26   ;;  %s5432_s24 = sld [smem:[#allocation32_spill]] }
 0x9a4   : > { %p48_p7 = scmp.ge.s32.totalorder %s51_s1, 6   ;;  %s5433_s25 = sld [smem:[#allocation33_spill]] }
 0x9a5   : > { %s5434_s26 = sld [smem:[#allocation44_spill]]  ;;  %s5440_s28 = smov %s4269_s29 }
 0x9a6   : > { %s5435_s27 = sld [smem:[#allocation35_spill]] }
 0x9a7   : > { %s5436_s0 = sld [smem:[#allocation45_spill]] }
 0x9a8   : > { %s5437_s30 = sld [smem:[#allocation38_spill]] }
 0x9a9   : > { %s5438_s16 = sld [smem:[#allocation41_spill]] }
 0x9aa   : > { %s5439_s19 = sld [smem:[#allocation42_spill]] }
 0x9ab   :  { %50 = sbr.rel (!%p48_p7) target bundleno = 40 (0x28), region = 293 }
 0x9ad   : > { %s5441_s29 = smov %s5436_s0  ;;  %s5442_s0 = smov %s4281_s18 }
 0x9af   : > { %s5443_s18 = smov %s5438_s16 }
 0x9b0   :  { %2667 = vsyncpa [#allocation3], 1 }
 0x9b1   :  { %2669 = vsyncpa [#allocation3 + $0x1], 1 }
 0x9b2   :  { %2670 = vsyncpa [#allocation6], 1 }
 0x9b3   :  { %2672 = vsyncpa [#allocation6 + $0x1], 1 }
 0x9b4   :  { %2673 = vsyncpa [#allocation9], 1 }
 0x9b5   :  { %2675 = vsyncpa [#allocation9 + $0x1], 1 }
 0x9b6   :  { %2676 = vsyncpa [#allocation12], 1 }
 0x9b7   :  { %2678 = vsyncpa [#allocation12 + $0x1], 1 }
 0x9b8   :  { %2679 = vsyncpa [#allocation15], 1 }
 0x9b9   :  { %2681 = vsyncpa [#allocation15 + $0x1], 1 }
 0x9ba   :  { %2682 = vsyncpa [#allocation18], 1 }
 0x9bb   :  { %2684 = vsyncpa [#allocation18 + $0x1], 1 }
 0x9bc   :  { %2685 = vsyncpa [#allocation21], 1 }
 0x9bd   :  { %2687 = vsyncpa [#allocation21 + $0x1], 1 }
 0x9be   :  { %2688 = vsyncpa [#allocation4], 1 }
 0x9bf   :  { %2690 = vsyncpa [#allocation4 + $0x1], 1 }

</bundles_post_ra>
